<compile_context>
chip_gen: v7x
topology: tpu7x:2x2x1
jax: 0.10.0
libtpu: 0.0.40
codegen_flags: <defaults>
</compile_context>

<pallas_src>
import math
import functools

import jax
import jax.numpy as jnp
from jax.experimental import pallas as pl
from jax.experimental.pallas import tpu as pltpu

_SQRT3 = math.sqrt(3.0)
_SQRT5 = math.sqrt(5.0)


def _round_up(x, m):
    return ((x + m - 1) // m) * m


def _matern_scale(nu):
    if nu == 0.5:
        return 1.0
    if nu == 1.5:
        return _SQRT3
    if nu == 2.5:
        return _SQRT5
    raise ValueError(f"Unsupported value of nu: {nu}")


def _matern_poly(d, nu):
    """Polynomial prefactor P(d) so that matern(d) = P(d) * exp(-s*d)."""
    if nu == 0.5:
        return None  # P == 1
    if nu == 1.5:
        return 1.0 + _SQRT3 * d
    if nu == 2.5:
        return 1.0 + _SQRT5 * d + (5.0 / 3.0) * (d * d)
    raise ValueError(f"Unsupported value of nu: {nu}")


def _matern_from_distance(d, nu):
    """Direct Matern kernel value from a non-negative distance tensor."""
    s = _matern_scale(nu)
    p = _matern_poly(d, nu)
    e = jnp.exp(-s * d)
    return e if p is None else p * e


def _elementwise_dtype():
    """bf16 Matern elementwise math on v6e/v7x (bf16 VPU/EUP); f32 on v5e & older."""
    try:
        kind = jax.devices()[0].device_kind.lower()
    except Exception:
        return jnp.float32
    if ("v6" in kind) or ("v7" in kind) or ("tpu7" in kind):
        return jnp.bfloat16
    return jnp.float32


# --------------------------------------------------------------------------
# Fused Pallas kernel: all MaternKANLinear layers for one batch tile.
# --------------------------------------------------------------------------
def _fused_kan_kernel(layer_cfgs, nu, ew_dtype, x_ref, *refs):
    """Run every KAN layer on one feature-major batch tile; intermediates stay in VMEM.

    x_ref   : (IN0, TB) f32                input tile, batch on the lane axis
    per layer l:
      refs[2l]   gcol_ref : (G*IN_l, 1) f32          row (g*IN + i) = grid[i, g]
      refs[2l+1] w_ref    : (OUT_pad_l, (G+1)*IN_l)  bf16 stacked [base | spline, g-major]
    refs[-2] o_ref   : (OUT_pad_last, TB) f32        output tile (lane-dense stores)
    refs[-1] phi_ref : (K_max, TB) bf16              scratch slab (matmul operand)
    """
    n_layers = len(layer_cfgs)
    o_ref = refs[2 * n_layers]
    phi_ref = refs[2 * n_layers + 1]
    s = _matern_scale(nu)

    cur = x_ref[...]                                            # (IN0, TB) f32
    for l, cfg in enumerate(layer_cfgs):
        gcol_ref = refs[2 * l]
        w_ref = refs[2 * l + 1]
        IN, OUT, G = cfg["in_features"], cfg["out_features"], cfg["grid_size"]

        # ---- base path: SiLU(x) = x * sigmoid(x) in f32; approx recip -> EUP slot ----
        sig = pl.reciprocal(1.0 + jnp.exp(-cur), approx=True)
        phi_ref[0:IN, :] = (cur * sig).astype(phi_ref.dtype)

        # ---- spline path: Matern features, one bf16 phi row-slab per grid point ----
        # exp(-s*|x-g|) = min(exp(s*x)*e^{-s*g}, exp(-s*x)*e^{s*g}):
        # 2 EUP exps per element total instead of G; the rest is VALU mul/min.
        x_ew = cur.astype(ew_dtype)
        ep = jnp.exp(s * x_ew)                                  # (IN, TB)
        en = jnp.exp(-s * x_ew)                                 # (IN, TB)
        g_all = gcol_ref[...].astype(ew_dtype)                  # (G*IN, 1)
        eg_n = jnp.exp(-s * g_all)                              # e^{-s*g}
        eg_p = jnp.exp(s * g_all)                               # e^{+s*g}
        for g in range(G):                                      # static unrolled
            lo, hi = g * IN, (g + 1) * IN
            gc = g_all[lo:hi, :]                                # (IN, 1) lane-broadcast
            d = jnp.abs(x_ew - gc)
            decay = jnp.minimum(ep * eg_n[lo:hi, :], en * eg_p[lo:hi, :])
            poly = _matern_poly(d, nu)
            k = decay if poly is None else poly * decay
            phi_ref[(g + 1) * IN:(g + 2) * IN, :] = k.astype(phi_ref.dtype)

        # ---- base + spline fused as ONE deep-K MXU matmul (bf16 in, f32 acc) ----
        K = (G + 1) * IN
        out = jnp.dot(w_ref[...], phi_ref[0:K, :],
                      preferred_element_type=jnp.float32)       # (OUT_pad, TB)

        if l + 1 < n_layers:
            cur = out[:OUT, :] if out.shape[0] != OUT else out  # drop OUT padding rows
        else:
            o_ref[...] = out.astype(o_ref.dtype)


# --------------------------------------------------------------------------
# Per-layer weight preparation (done once, hoisted out of the forward path).
# --------------------------------------------------------------------------
def prepare_kan_layer(params, *, compute_dtype=jnp.bfloat16):
    base_weight = params["base_weight"]                  # (out, in)
    spline_weight = params["spline_weight"]              # (out, in, G)
    spline_scaler = params["spline_scaler"]              # (out, in)
    grid = params["grid"]                                # (in, G)
    out_f, in_f = base_weight.shape
    G = grid.shape[1]

    # Stacked weight columns: [base (in) | spline, g-major in-minor (G*in)]
    scaled = spline_weight * spline_scaler[:, :, None]             # (out, in, G)
    w_spl = jnp.transpose(scaled, (0, 2, 1)).reshape(out_f, G * in_f)
    w_stk = jnp.concatenate([base_weight, w_spl], axis=1)          # (out, (G+1)*in)

    # Pad OUT only to the f32 sublane tile (8). Lanes are the batch axis, so
    # stores are already unmasked; 128-padding OUT only wasted MXU/vst/HBM.
    out_pad = _round_up(out_f, 8)
    if out_pad != out_f:
        w_stk = jnp.pad(w_stk, ((0, out_pad - out_f), (0, 0)))
    w_stk = w_stk.astype(compute_dtype)                            # bf16 MXU operands

    # Flattened grid column: row (g*in + i) = grid[i, g].
    gcol = grid.T.reshape(G * in_f, 1).astype(jnp.float32)

    return dict(w_stacked=w_stk, gcol=gcol, in_features=in_f,
                out_features=out_f, grid_size=G)


# --------------------------------------------------------------------------
# Fused multi-layer forward (single pallas_call).
# --------------------------------------------------------------------------
def matern_kan_forward(prepared_layers, x, *, nu=1.5, tile_b=512,
                       vmem_limit_bytes=32 * 1024 * 1024):
    in0 = prepared_layers[0]["in_features"]
    out_last = prepared_layers[-1]["out_features"]
    out_pad_last = prepared_layers[-1]["w_stacked"].shape[0]
    ew_dtype = _elementwise_dtype()

    orig = x.shape
    x2d = x.reshape(-1, in0).astype(jnp.float32)
    B = x2d.shape[0]

    # Large batch tiles (amortize ~0.35us/grid-step) but keep >= 2 grid steps
    # when the batch allows so both v7x TensorCores get a "parallel" tile.
    b128 = _round_up(B, 128)
    tb = max(128, min(tile_b, b128))
    if b128 >= 2 * 128:
        tb = min(tb, _round_up((b128 + 1) // 2, 128))
    b_pad = _round_up(B, tb)

    # One transpose (+ pad only when B is ragged) of the *network* input only;
    # with the fully fused kernel no intermediate activation touches HBM.
    # Padded columns produce garbage that is sliced off below (never read).
    xt = x2d.T                                                     # (IN0, B)
    if b_pad != B:
        xt = jnp.pad(xt, ((0, 0), (0, b_pad - B)))

    layer_cfgs = tuple(
        dict(in_features=p["in_features"], out_features=p["out_features"],
             grid_size=p["grid_size"]) for p in prepared_layers)
    k_max = max((p["grid_size"] + 1) * p["in_features"] for p in prepared_layers)

    in_specs = [pl.BlockSpec((in0, tb), lambda i: (0, i))]
    args = [xt]
    for p in prepared_layers:
        # Grid-invariant operands: whole, unblocked VMEM (single buffer).
        in_specs.append(pl.BlockSpec(memory_space=pltpu.MemorySpace.VMEM))
        in_specs.append(pl.BlockSpec(memory_space=pltpu.MemorySpace.VMEM))
        args.append(p["gcol"])
        args.append(p["w_stacked"])

    kernel = functools.partial(_fused_kan_kernel, layer_cfgs, nu, ew_dtype)
    out_t = pl.pallas_call(
        kernel,
        out_shape=jax.ShapeDtypeStruct((out_pad_last, b_pad), jnp.float32),
        grid_spec=pltpu.PrefetchScalarGridSpec(
            num_scalar_prefetch=0,
            grid=(b_pad // tb,),
            in_specs=in_specs,
            out_specs=pl.BlockSpec((out_pad_last, tb), lambda i: (0, i)),
            scratch_shapes=[pltpu.VMEM((k_max, tb), jnp.bfloat16)],
        ),
        compiler_params=pltpu.CompilerParams(
            dimension_semantics=("parallel",),
            vmem_limit_bytes=vmem_limit_bytes,
        ),
    )(*args)

    out = out_t[:out_last, :B].T                                   # (B, OUT_last)
    return out.reshape(*orig[:-1], out_last)


# --------------------------------------------------------------------------
# Parameter setup (deterministic synthetic init, same shapes as
# MaternKANLinear.__init__; NOT a checkpoint load).
# --------------------------------------------------------------------------
def init_kan_layer(key, in_f, out_f, grid_size=5, grid_range=(-1.0, 1.0)):
    k1, k2, k3 = jax.random.split(key, 3)
    h = (grid_range[1] - grid_range[0]) / grid_size
    grid_row = jnp.arange(grid_size, dtype=jnp.float32) * h + grid_range[0]
    grid = jnp.broadcast_to(grid_row, (in_f, grid_size))           # (in, G)
    bound = math.sqrt(6.0 / in_f)                                  # kaiming-uniform-like
    base_weight = jax.random.uniform(k1, (out_f, in_f), jnp.float32, -bound, bound)
    spline_weight = 0.1 * jax.random.normal(k2, (out_f, in_f, grid_size), jnp.float32)
    spline_scaler = jax.random.uniform(k3, (out_f, in_f), jnp.float32, -bound, bound)
    # TODO(synk): PyTorch init fits spline_weight with a curve2coeff lstsq of random
    # noise; here we substitute a deterministic random init of identical shape.
    return dict(grid=grid, base_weight=base_weight,
                spline_weight=spline_weight, spline_scaler=spline_scaler)


# --------------------------------------------------------------------------
# References
# --------------------------------------------------------------------------
def kan_layer_ref(params, x, *, nu=1.5):
    """Pure-JAX f32 mirror of MaternKANLinear.forward."""
    out_f, in_f = params["base_weight"].shape
    orig = x.shape
    x2d = x.reshape(-1, in_f)
    base = jax.nn.silu(x2d) @ params["base_weight"].T
    d = jnp.abs(x2d[:, :, None] - params["grid"][None, :, :])      # (B, in, G)
    k = _matern_from_distance(d, nu)
    scaled = params["spline_weight"] * params["spline_scaler"][:, :, None]
    spline = k.reshape(x2d.shape[0], -1) @ scaled.reshape(out_f, -1).T
    return (base + spline).reshape(*orig[:-1], out_f)


def matern_kan_ref(layer_params, x, *, nu=1.5):
    for params in layer_params:
        x = kan_layer_ref(params, x, nu=nu)
    return x


def matern_kan_ref_matched(prepared_layers, x, *, nu=1.5, ew_dtype=jnp.float32):
    """Mirrors the kernel's math (bf16 matmul operands, ew_dtype Matern slab,
    factored exponentials) so it can be checked at tight tolerance."""
    in0 = prepared_layers[0]["in_features"]
    orig = x.shape
    cur = x.reshape(-1, in0).astype(jnp.float32)
    s = _matern_scale(nu)
    for prep in prepared_layers:
        in_f, out_f, G = prep["in_features"], prep["out_features"], prep["grid_size"]
        base = cur * (1.0 / (1.0 + jnp.exp(-cur)))                  # (B, in) f32
        x_ew = cur.astype(ew_dtype)
        g_all = prep["gcol"].reshape(G, in_f).astype(ew_dtype)      # row g = grid[:, g]
        ep = jnp.exp(s * x_ew)
        en = jnp.exp(-s * x_ew)
        feats = [base.astype(jnp.bfloat16)]
        for g in range(G):
            gr = g_all[g][None, :]                                  # (1, in)
            d = jnp.abs(x_ew - gr)
            decay = jnp.minimum(ep * jnp.exp(-s * gr), en * jnp.exp(s * gr))
            poly = _matern_poly(d, nu)
            k = decay if poly is None else poly * decay
            feats.append(k.astype(jnp.bfloat16))
        phi = jnp.concatenate(feats, axis=1)                        # (B, (G+1)in) bf16
        out = jnp.dot(phi, prep["w_stacked"].T,
                      preferred_element_type=jnp.float32)
        cur = out[:, :out_f]
    return cur.reshape(*orig[:-1], prepared_layers[-1]["out_features"])


# --------------------------------------------------------------------------
if __name__ == "__main__":
    key = jax.random.PRNGKey(0)
    layers_hidden = [16, 32, 8]
    grid_size = 5
    nu = 1.5

    # Deterministic layer parameters.
    layer_params = []
    for fin, fout in zip(layers_hidden, layers_hidden[1:]):
        key, sub = jax.random.split(key)
        layer_params.append(init_kan_layer(sub, fin, fout, grid_size=grid_size))
    prepared = [prepare_kan_layer(p) for p in layer_params]

    # Small example input: (4, 128, 16) -> 512 rows -> two 256-row batch tiles.
    key, xkey = jax.random.split(key)
    x = jax.random.normal(xkey, (4, 128, layers_hidden[0]), jnp.float32)

    out = matern_kan_forward(prepared, x, nu=nu)
    out = jax.block_until_ready(out)
    assert out.shape == (4, 128, layers_hidden[-1])

    # Tight check vs a reference mirroring the kernel's precision choices
    # (bf16 matmul operands, per-chip elementwise dtype, factored exponentials).
    ref_matched = matern_kan_ref_matched(prepared, x, nu=nu,
                                         ew_dtype=_elementwise_dtype())
    assert jnp.allclose(out, ref_matched, rtol=3e-2, atol=3e-2), \
        "mismatch vs matched-precision reference"

    # Looser check vs the exact f32 PyTorch-mirror reference (bf16 MXU drift).
    ref_f32 = matern_kan_ref(layer_params, x, nu=nu)
    assert jnp.allclose(out, ref_f32, rtol=1e-1, atol=1e-1), \
        "mismatch vs f32 reference beyond expected bf16 drift"

    print("KERNEL_OK")
</pallas_src>

<mosaic_0001>
module attributes {stable_mosaic.version = 11 : i64} {
  func.func @_fused_kan_kernel(%arg0: i32, %arg1: memref<16x256xf32, #tpu.memory_space<vmem>>, %arg2: memref<80x1xf32, #tpu.memory_space<vmem>>, %arg3: memref<32x96xbf16, #tpu.memory_space<vmem>>, %arg4: memref<160x1xf32, #tpu.memory_space<vmem>>, %arg5: memref<8x192xbf16, #tpu.memory_space<vmem>>, %arg6: memref<8x256xf32, #tpu.memory_space<vmem>>, %arg7: memref<192x256xbf16, #tpu.memory_space<vmem>>) attributes {dimension_semantics = [#tpu.dimension_semantics<parallel>], iteration_bounds = array<i64: 2>, scalar_prefetch = 0 : i64, scratch_operands = 1 : i64, tpu.core_type = #tpu.core_type<tc>, window_params = [{transform_indices = @transform_0, window_bounds = array<i64: 16, 256>}, {pipeline_mode = #tpu.pipeline_mode<synchronous>, transform_indices = @transform_1, window_bounds = array<i64: 80, 1>}, {pipeline_mode = #tpu.pipeline_mode<synchronous>, transform_indices = @transform_2, window_bounds = array<i64: 32, 96>}, {pipeline_mode = #tpu.pipeline_mode<synchronous>, transform_indices = @transform_3, window_bounds = array<i64: 160, 1>}, {pipeline_mode = #tpu.pipeline_mode<synchronous>, transform_indices = @transform_4, window_bounds = array<i64: 8, 192>}, {transform_indices = @transform_5, window_bounds = array<i64: 8, 256>}]} {
    %c0 = arith.constant 0 : index
    %c0_0 = arith.constant 0 : index
    %0 = vector.load %arg1[%c0, %c0_0] : memref<16x256xf32, #tpu.memory_space<vmem>>, vector<16x256xf32>
    %cst = arith.constant 0.000000e+00 : f32
    %1 = vector.broadcast %cst : f32 to vector<16x256xf32>
    %2 = arith.subf %1, %0 : vector<16x256xf32>
    %3 = math.exp %2 : vector<16x256xf32>
    %cst_1 = arith.constant 1.000000e+00 : f32
    %4 = vector.broadcast %cst_1 : f32 to vector<16x256xf32>
    %5 = arith.addf %4, %3 : vector<16x256xf32>
    %6 = tpu.reciprocal %5 {approx = true} : vector<16x256xf32> -> vector<16x256xf32>
    %7 = arith.mulf %0, %6 : vector<16x256xf32>
    %8 = arith.truncf %7 : vector<16x256xf32> to vector<16x256xbf16>
    %c0_2 = arith.constant 0 : index
    %c0_3 = arith.constant 0 : index
    %9 = vector.load %arg7[%c0_2, %c0_3] : memref<192x256xbf16, #tpu.memory_space<vmem>>, vector<16x256xbf16>
    tpu.vector_store %arg7[%c0_2, %c0_3], %8 {strides = array<i32>} : memref<192x256xbf16, #tpu.memory_space<vmem>>, vector<16x256xbf16>,
    %cst_4 = arith.constant 1.73205078 : f32
    %10 = vector.broadcast %cst_4 : f32 to vector<16x256xf32>
    %11 = arith.mulf %10, %0 : vector<16x256xf32>
    %12 = math.exp %11 : vector<16x256xf32>
    %cst_5 = arith.constant -1.73205078 : f32
    %13 = vector.broadcast %cst_5 : f32 to vector<16x256xf32>
    %14 = arith.mulf %13, %0 : vector<16x256xf32>
    %15 = math.exp %14 : vector<16x256xf32>
    %c0_6 = arith.constant 0 : index
    %c0_7 = arith.constant 0 : index
    %16 = vector.load %arg2[%c0_6, %c0_7] : memref<80x1xf32, #tpu.memory_space<vmem>>, vector<80x1xf32>
    %cst_8 = arith.constant -1.73205078 : f32
    %17 = vector.broadcast %cst_8 : f32 to vector<80x1xf32>
    %18 = arith.mulf %17, %16 : vector<80x1xf32>
    %19 = math.exp %18 : vector<80x1xf32>
    %cst_9 = arith.constant 1.73205078 : f32
    %20 = vector.broadcast %cst_9 : f32 to vector<80x1xf32>
    %21 = arith.mulf %20, %16 : vector<80x1xf32>
    %22 = math.exp %21 : vector<80x1xf32>
    %23 = vector.extract_strided_slice %16 {offsets = [0, 0], sizes = [16, 1], strides = [1, 1]} : vector<80x1xf32> to vector<16x1xf32>
    %24 = vector.broadcast %23 : vector<16x1xf32> to vector<16x256xf32>
    %25 = arith.subf %0, %24 : vector<16x256xf32>
    %26 = math.absf %25 : vector<16x256xf32>
    %27 = vector.extract_strided_slice %19 {offsets = [0, 0], sizes = [16, 1], strides = [1, 1]} : vector<80x1xf32> to vector<16x1xf32>
    %28 = vector.broadcast %27 : vector<16x1xf32> to vector<16x256xf32>
    %29 = arith.mulf %12, %28 : vector<16x256xf32>
    %30 = vector.extract_strided_slice %22 {offsets = [0, 0], sizes = [16, 1], strides = [1, 1]} : vector<80x1xf32> to vector<16x1xf32>
    %31 = vector.broadcast %30 : vector<16x1xf32> to vector<16x256xf32>
    %32 = arith.mulf %15, %31 : vector<16x256xf32>
    %33 = arith.minimumf %29, %32 : vector<16x256xf32>
    %cst_10 = arith.constant 1.73205078 : f32
    %34 = vector.broadcast %cst_10 : f32 to vector<16x256xf32>
    %35 = arith.mulf %34, %26 : vector<16x256xf32>
    %cst_11 = arith.constant 1.000000e+00 : f32
    %36 = vector.broadcast %cst_11 : f32 to vector<16x256xf32>
    %37 = arith.addf %36, %35 : vector<16x256xf32>
    %38 = arith.mulf %37, %33 : vector<16x256xf32>
    %39 = arith.truncf %38 : vector<16x256xf32> to vector<16x256xbf16>
    %c16 = arith.constant 16 : index
    %c0_12 = arith.constant 0 : index
    %40 = vector.load %arg7[%c16, %c0_12] : memref<192x256xbf16, #tpu.memory_space<vmem>>, vector<16x256xbf16>
    tpu.vector_store %arg7[%c16, %c0_12], %39 {strides = array<i32>} : memref<192x256xbf16, #tpu.memory_space<vmem>>, vector<16x256xbf16>,
    %41 = vector.extract_strided_slice %16 {offsets = [16, 0], sizes = [16, 1], strides = [1, 1]} : vector<80x1xf32> to vector<16x1xf32>
    %42 = vector.broadcast %41 : vector<16x1xf32> to vector<16x256xf32>
    %43 = arith.subf %0, %42 : vector<16x256xf32>
    %44 = math.absf %43 : vector<16x256xf32>
    %45 = vector.extract_strided_slice %19 {offsets = [16, 0], sizes = [16, 1], strides = [1, 1]} : vector<80x1xf32> to vector<16x1xf32>
    %46 = vector.broadcast %45 : vector<16x1xf32> to vector<16x256xf32>
    %47 = arith.mulf %12, %46 : vector<16x256xf32>
    %48 = vector.extract_strided_slice %22 {offsets = [16, 0], sizes = [16, 1], strides = [1, 1]} : vector<80x1xf32> to vector<16x1xf32>
    %49 = vector.broadcast %48 : vector<16x1xf32> to vector<16x256xf32>
    %50 = arith.mulf %15, %49 : vector<16x256xf32>
    %51 = arith.minimumf %47, %50 : vector<16x256xf32>
    %cst_13 = arith.constant 1.73205078 : f32
    %52 = vector.broadcast %cst_13 : f32 to vector<16x256xf32>
    %53 = arith.mulf %52, %44 : vector<16x256xf32>
    %cst_14 = arith.constant 1.000000e+00 : f32
    %54 = vector.broadcast %cst_14 : f32 to vector<16x256xf32>
    %55 = arith.addf %54, %53 : vector<16x256xf32>
    %56 = arith.mulf %55, %51 : vector<16x256xf32>
    %57 = arith.truncf %56 : vector<16x256xf32> to vector<16x256xbf16>
    %c32 = arith.constant 32 : index
    %c0_15 = arith.constant 0 : index
    %58 = vector.load %arg7[%c32, %c0_15] : memref<192x256xbf16, #tpu.memory_space<vmem>>, vector<16x256xbf16>
    tpu.vector_store %arg7[%c32, %c0_15], %57 {strides = array<i32>} : memref<192x256xbf16, #tpu.memory_space<vmem>>, vector<16x256xbf16>,
    %59 = vector.extract_strided_slice %16 {offsets = [32, 0], sizes = [16, 1], strides = [1, 1]} : vector<80x1xf32> to vector<16x1xf32>
    %60 = vector.broadcast %59 : vector<16x1xf32> to vector<16x256xf32>
    %61 = arith.subf %0, %60 : vector<16x256xf32>
    %62 = math.absf %61 : vector<16x256xf32>
    %63 = vector.extract_strided_slice %19 {offsets = [32, 0], sizes = [16, 1], strides = [1, 1]} : vector<80x1xf32> to vector<16x1xf32>
    %64 = vector.broadcast %63 : vector<16x1xf32> to vector<16x256xf32>
    %65 = arith.mulf %12, %64 : vector<16x256xf32>
    %66 = vector.extract_strided_slice %22 {offsets = [32, 0], sizes = [16, 1], strides = [1, 1]} : vector<80x1xf32> to vector<16x1xf32>
    %67 = vector.broadcast %66 : vector<16x1xf32> to vector<16x256xf32>
    %68 = arith.mulf %15, %67 : vector<16x256xf32>
    %69 = arith.minimumf %65, %68 : vector<16x256xf32>
    %cst_16 = arith.constant 1.73205078 : f32
    %70 = vector.broadcast %cst_16 : f32 to vector<16x256xf32>
    %71 = arith.mulf %70, %62 : vector<16x256xf32>
    %cst_17 = arith.constant 1.000000e+00 : f32
    %72 = vector.broadcast %cst_17 : f32 to vector<16x256xf32>
    %73 = arith.addf %72, %71 : vector<16x256xf32>
    %74 = arith.mulf %73, %69 : vector<16x256xf32>
    %75 = arith.truncf %74 : vector<16x256xf32> to vector<16x256xbf16>
    %c48 = arith.constant 48 : index
    %c0_18 = arith.constant 0 : index
    %76 = vector.load %arg7[%c48, %c0_18] : memref<192x256xbf16, #tpu.memory_space<vmem>>, vector<16x256xbf16>
    tpu.vector_store %arg7[%c48, %c0_18], %75 {strides = array<i32>} : memref<192x256xbf16, #tpu.memory_space<vmem>>, vector<16x256xbf16>,
    %77 = vector.extract_strided_slice %16 {offsets = [48, 0], sizes = [16, 1], strides = [1, 1]} : vector<80x1xf32> to vector<16x1xf32>
    %78 = vector.broadcast %77 : vector<16x1xf32> to vector<16x256xf32>
    %79 = arith.subf %0, %78 : vector<16x256xf32>
    %80 = math.absf %79 : vector<16x256xf32>
    %81 = vector.extract_strided_slice %19 {offsets = [48, 0], sizes = [16, 1], strides = [1, 1]} : vector<80x1xf32> to vector<16x1xf32>
    %82 = vector.broadcast %81 : vector<16x1xf32> to vector<16x256xf32>
    %83 = arith.mulf %12, %82 : vector<16x256xf32>
    %84 = vector.extract_strided_slice %22 {offsets = [48, 0], sizes = [16, 1], strides = [1, 1]} : vector<80x1xf32> to vector<16x1xf32>
    %85 = vector.broadcast %84 : vector<16x1xf32> to vector<16x256xf32>
    %86 = arith.mulf %15, %85 : vector<16x256xf32>
    %87 = arith.minimumf %83, %86 : vector<16x256xf32>
    %cst_19 = arith.constant 1.73205078 : f32
    %88 = vector.broadcast %cst_19 : f32 to vector<16x256xf32>
    %89 = arith.mulf %88, %80 : vector<16x256xf32>
    %cst_20 = arith.constant 1.000000e+00 : f32
    %90 = vector.broadcast %cst_20 : f32 to vector<16x256xf32>
    %91 = arith.addf %90, %89 : vector<16x256xf32>
    %92 = arith.mulf %91, %87 : vector<16x256xf32>
    %93 = arith.truncf %92 : vector<16x256xf32> to vector<16x256xbf16>
    %c64 = arith.constant 64 : index
    %c0_21 = arith.constant 0 : index
    %94 = vector.load %arg7[%c64, %c0_21] : memref<192x256xbf16, #tpu.memory_space<vmem>>, vector<16x256xbf16>
    tpu.vector_store %arg7[%c64, %c0_21], %93 {strides = array<i32>} : memref<192x256xbf16, #tpu.memory_space<vmem>>, vector<16x256xbf16>,
    %95 = vector.extract_strided_slice %16 {offsets = [64, 0], sizes = [16, 1], strides = [1, 1]} : vector<80x1xf32> to vector<16x1xf32>
    %96 = vector.broadcast %95 : vector<16x1xf32> to vector<16x256xf32>
    %97 = arith.subf %0, %96 : vector<16x256xf32>
    %98 = math.absf %97 : vector<16x256xf32>
    %99 = vector.extract_strided_slice %19 {offsets = [64, 0], sizes = [16, 1], strides = [1, 1]} : vector<80x1xf32> to vector<16x1xf32>
    %100 = vector.broadcast %99 : vector<16x1xf32> to vector<16x256xf32>
    %101 = arith.mulf %12, %100 : vector<16x256xf32>
    %102 = vector.extract_strided_slice %22 {offsets = [64, 0], sizes = [16, 1], strides = [1, 1]} : vector<80x1xf32> to vector<16x1xf32>
    %103 = vector.broadcast %102 : vector<16x1xf32> to vector<16x256xf32>
    %104 = arith.mulf %15, %103 : vector<16x256xf32>
    %105 = arith.minimumf %101, %104 : vector<16x256xf32>
    %cst_22 = arith.constant 1.73205078 : f32
    %106 = vector.broadcast %cst_22 : f32 to vector<16x256xf32>
    %107 = arith.mulf %106, %98 : vector<16x256xf32>
    %cst_23 = arith.constant 1.000000e+00 : f32
    %108 = vector.broadcast %cst_23 : f32 to vector<16x256xf32>
    %109 = arith.addf %108, %107 : vector<16x256xf32>
    %110 = arith.mulf %109, %105 : vector<16x256xf32>
    %111 = arith.truncf %110 : vector<16x256xf32> to vector<16x256xbf16>
    %c80 = arith.constant 80 : index
    %c0_24 = arith.constant 0 : index
    %112 = vector.load %arg7[%c80, %c0_24] : memref<192x256xbf16, #tpu.memory_space<vmem>>, vector<16x256xbf16>
    tpu.vector_store %arg7[%c80, %c0_24], %111 {strides = array<i32>} : memref<192x256xbf16, #tpu.memory_space<vmem>>, vector<16x256xbf16>,
    %c0_25 = arith.constant 0 : index
    %c0_26 = arith.constant 0 : index
    %113 = vector.load %arg3[%c0_25, %c0_26] : memref<32x96xbf16, #tpu.memory_space<vmem>>, vector<32x96xbf16>
    %c0_27 = arith.constant 0 : index
    %c0_28 = arith.constant 0 : index
    %114 = vector.load %arg7[%c0_27, %c0_28] : memref<192x256xbf16, #tpu.memory_space<vmem>>, vector<96x256xbf16>
    %cst_29 = arith.constant dense<0.000000e+00> : vector<32x256xf32>
    %115 = tpu.matmul %113, %114, %cst_29 {dimension_numbers = #tpu.dot_dimension_numbers<[1], [0], [0], [1], [0, 0, 1, 1], [], []>} : vector<32x96xbf16>, vector<96x256xbf16>, vector<32x256xf32> -> vector<32x256xf32>
    %cst_30 = arith.constant 0.000000e+00 : f32
    %116 = vector.broadcast %cst_30 : f32 to vector<32x256xf32>
    %117 = arith.subf %116, %115 : vector<32x256xf32>
    %118 = math.exp %117 : vector<32x256xf32>
    %cst_31 = arith.constant 1.000000e+00 : f32
    %119 = vector.broadcast %cst_31 : f32 to vector<32x256xf32>
    %120 = arith.addf %119, %118 : vector<32x256xf32>
    %121 = tpu.reciprocal %120 {approx = true} : vector<32x256xf32> -> vector<32x256xf32>
    %122 = arith.mulf %115, %121 : vector<32x256xf32>
    %123 = arith.truncf %122 : vector<32x256xf32> to vector<32x256xbf16>
    %c0_32 = arith.constant 0 : index
    %c0_33 = arith.constant 0 : index
    %124 = vector.load %arg7[%c0_32, %c0_33] : memref<192x256xbf16, #tpu.memory_space<vmem>>, vector<32x256xbf16>
    tpu.vector_store %arg7[%c0_32, %c0_33], %123 {strides = array<i32>} : memref<192x256xbf16, #tpu.memory_space<vmem>>, vector<32x256xbf16>,
    %cst_34 = arith.constant 1.73205078 : f32
    %125 = vector.broadcast %cst_34 : f32 to vector<32x256xf32>
    %126 = arith.mulf %125, %115 : vector<32x256xf32>
    %127 = math.exp %126 : vector<32x256xf32>
    %cst_35 = arith.constant -1.73205078 : f32
    %128 = vector.broadcast %cst_35 : f32 to vector<32x256xf32>
    %129 = arith.mulf %128, %115 : vector<32x256xf32>
    %130 = math.exp %129 : vector<32x256xf32>
    %c0_36 = arith.constant 0 : index
    %c0_37 = arith.constant 0 : index
    %131 = vector.load %arg4[%c0_36, %c0_37] : memref<160x1xf32, #tpu.memory_space<vmem>>, vector<160x1xf32>
    %cst_38 = arith.constant -1.73205078 : f32
    %132 = vector.broadcast %cst_38 : f32 to vector<160x1xf32>
    %133 = arith.mulf %132, %131 : vector<160x1xf32>
    %134 = math.exp %133 : vector<160x1xf32>
    %cst_39 = arith.constant 1.73205078 : f32
    %135 = vector.broadcast %cst_39 : f32 to vector<160x1xf32>
    %136 = arith.mulf %135, %131 : vector<160x1xf32>
    %137 = math.exp %136 : vector<160x1xf32>
    %138 = vector.extract_strided_slice %131 {offsets = [0, 0], sizes = [32, 1], strides = [1, 1]} : vector<160x1xf32> to vector<32x1xf32>
    %139 = vector.broadcast %138 : vector<32x1xf32> to vector<32x256xf32>
    %140 = arith.subf %115, %139 : vector<32x256xf32>
    %141 = math.absf %140 : vector<32x256xf32>
    %142 = vector.extract_strided_slice %134 {offsets = [0, 0], sizes = [32, 1], strides = [1, 1]} : vector<160x1xf32> to vector<32x1xf32>
    %143 = vector.broadcast %142 : vector<32x1xf32> to vector<32x256xf32>
    %144 = arith.mulf %127, %143 : vector<32x256xf32>
    %145 = vector.extract_strided_slice %137 {offsets = [0, 0], sizes = [32, 1], strides = [1, 1]} : vector<160x1xf32> to vector<32x1xf32>
    %146 = vector.broadcast %145 : vector<32x1xf32> to vector<32x256xf32>
    %147 = arith.mulf %130, %146 : vector<32x256xf32>
    %148 = arith.minimumf %144, %147 : vector<32x256xf32>
    %cst_40 = arith.constant 1.73205078 : f32
    %149 = vector.broadcast %cst_40 : f32 to vector<32x256xf32>
    %150 = arith.mulf %149, %141 : vector<32x256xf32>
    %cst_41 = arith.constant 1.000000e+00 : f32
    %151 = vector.broadcast %cst_41 : f32 to vector<32x256xf32>
    %152 = arith.addf %151, %150 : vector<32x256xf32>
    %153 = arith.mulf %152, %148 : vector<32x256xf32>
    %154 = arith.truncf %153 : vector<32x256xf32> to vector<32x256xbf16>
    %c32_42 = arith.constant 32 : index
    %c0_43 = arith.constant 0 : index
    %155 = vector.load %arg7[%c32_42, %c0_43] : memref<192x256xbf16, #tpu.memory_space<vmem>>, vector<32x256xbf16>
    tpu.vector_store %arg7[%c32_42, %c0_43], %154 {strides = array<i32>} : memref<192x256xbf16, #tpu.memory_space<vmem>>, vector<32x256xbf16>,
    %156 = vector.extract_strided_slice %131 {offsets = [32, 0], sizes = [32, 1], strides = [1, 1]} : vector<160x1xf32> to vector<32x1xf32>
    %157 = vector.broadcast %156 : vector<32x1xf32> to vector<32x256xf32>
    %158 = arith.subf %115, %157 : vector<32x256xf32>
    %159 = math.absf %158 : vector<32x256xf32>
    %160 = vector.extract_strided_slice %134 {offsets = [32, 0], sizes = [32, 1], strides = [1, 1]} : vector<160x1xf32> to vector<32x1xf32>
    %161 = vector.broadcast %160 : vector<32x1xf32> to vector<32x256xf32>
    %162 = arith.mulf %127, %161 : vector<32x256xf32>
    %163 = vector.extract_strided_slice %137 {offsets = [32, 0], sizes = [32, 1], strides = [1, 1]} : vector<160x1xf32> to vector<32x1xf32>
    %164 = vector.broadcast %163 : vector<32x1xf32> to vector<32x256xf32>
    %165 = arith.mulf %130, %164 : vector<32x256xf32>
    %166 = arith.minimumf %162, %165 : vector<32x256xf32>
    %cst_44 = arith.constant 1.73205078 : f32
    %167 = vector.broadcast %cst_44 : f32 to vector<32x256xf32>
    %168 = arith.mulf %167, %159 : vector<32x256xf32>
    %cst_45 = arith.constant 1.000000e+00 : f32
    %169 = vector.broadcast %cst_45 : f32 to vector<32x256xf32>
    %170 = arith.addf %169, %168 : vector<32x256xf32>
    %171 = arith.mulf %170, %166 : vector<32x256xf32>
    %172 = arith.truncf %171 : vector<32x256xf32> to vector<32x256xbf16>
    %c64_46 = arith.constant 64 : index
    %c0_47 = arith.constant 0 : index
    %173 = vector.load %arg7[%c64_46, %c0_47] : memref<192x256xbf16, #tpu.memory_space<vmem>>, vector<32x256xbf16>
    tpu.vector_store %arg7[%c64_46, %c0_47], %172 {strides = array<i32>} : memref<192x256xbf16, #tpu.memory_space<vmem>>, vector<32x256xbf16>,
    %174 = vector.extract_strided_slice %131 {offsets = [64, 0], sizes = [32, 1], strides = [1, 1]} : vector<160x1xf32> to vector<32x1xf32>
    %175 = vector.broadcast %174 : vector<32x1xf32> to vector<32x256xf32>
    %176 = arith.subf %115, %175 : vector<32x256xf32>
    %177 = math.absf %176 : vector<32x256xf32>
    %178 = vector.extract_strided_slice %134 {offsets = [64, 0], sizes = [32, 1], strides = [1, 1]} : vector<160x1xf32> to vector<32x1xf32>
    %179 = vector.broadcast %178 : vector<32x1xf32> to vector<32x256xf32>
    %180 = arith.mulf %127, %179 : vector<32x256xf32>
    %181 = vector.extract_strided_slice %137 {offsets = [64, 0], sizes = [32, 1], strides = [1, 1]} : vector<160x1xf32> to vector<32x1xf32>
    %182 = vector.broadcast %181 : vector<32x1xf32> to vector<32x256xf32>
    %183 = arith.mulf %130, %182 : vector<32x256xf32>
    %184 = arith.minimumf %180, %183 : vector<32x256xf32>
    %cst_48 = arith.constant 1.73205078 : f32
    %185 = vector.broadcast %cst_48 : f32 to vector<32x256xf32>
    %186 = arith.mulf %185, %177 : vector<32x256xf32>
    %cst_49 = arith.constant 1.000000e+00 : f32
    %187 = vector.broadcast %cst_49 : f32 to vector<32x256xf32>
    %188 = arith.addf %187, %186 : vector<32x256xf32>
    %189 = arith.mulf %188, %184 : vector<32x256xf32>
    %190 = arith.truncf %189 : vector<32x256xf32> to vector<32x256xbf16>
    %c96 = arith.constant 96 : index
    %c0_50 = arith.constant 0 : index
    %191 = vector.load %arg7[%c96, %c0_50] : memref<192x256xbf16, #tpu.memory_space<vmem>>, vector<32x256xbf16>
    tpu.vector_store %arg7[%c96, %c0_50], %190 {strides = array<i32>} : memref<192x256xbf16, #tpu.memory_space<vmem>>, vector<32x256xbf16>,
    %192 = vector.extract_strided_slice %131 {offsets = [96, 0], sizes = [32, 1], strides = [1, 1]} : vector<160x1xf32> to vector<32x1xf32>
    %193 = vector.broadcast %192 : vector<32x1xf32> to vector<32x256xf32>
    %194 = arith.subf %115, %193 : vector<32x256xf32>
    %195 = math.absf %194 : vector<32x256xf32>
    %196 = vector.extract_strided_slice %134 {offsets = [96, 0], sizes = [32, 1], strides = [1, 1]} : vector<160x1xf32> to vector<32x1xf32>
    %197 = vector.broadcast %196 : vector<32x1xf32> to vector<32x256xf32>
    %198 = arith.mulf %127, %197 : vector<32x256xf32>
    %199 = vector.extract_strided_slice %137 {offsets = [96, 0], sizes = [32, 1], strides = [1, 1]} : vector<160x1xf32> to vector<32x1xf32>
    %200 = vector.broadcast %199 : vector<32x1xf32> to vector<32x256xf32>
    %201 = arith.mulf %130, %200 : vector<32x256xf32>
    %202 = arith.minimumf %198, %201 : vector<32x256xf32>
    %cst_51 = arith.constant 1.73205078 : f32
    %203 = vector.broadcast %cst_51 : f32 to vector<32x256xf32>
    %204 = arith.mulf %203, %195 : vector<32x256xf32>
    %cst_52 = arith.constant 1.000000e+00 : f32
    %205 = vector.broadcast %cst_52 : f32 to vector<32x256xf32>
    %206 = arith.addf %205, %204 : vector<32x256xf32>
    %207 = arith.mulf %206, %202 : vector<32x256xf32>
    %208 = arith.truncf %207 : vector<32x256xf32> to vector<32x256xbf16>
    %c128 = arith.constant 128 : index
    %c0_53 = arith.constant 0 : index
    %209 = vector.load %arg7[%c128, %c0_53] : memref<192x256xbf16, #tpu.memory_space<vmem>>, vector<32x256xbf16>
    tpu.vector_store %arg7[%c128, %c0_53], %208 {strides = array<i32>} : memref<192x256xbf16, #tpu.memory_space<vmem>>, vector<32x256xbf16>,
    %210 = vector.extract_strided_slice %131 {offsets = [128, 0], sizes = [32, 1], strides = [1, 1]} : vector<160x1xf32> to vector<32x1xf32>
    %211 = vector.broadcast %210 : vector<32x1xf32> to vector<32x256xf32>
    %212 = arith.subf %115, %211 : vector<32x256xf32>
    %213 = math.absf %212 : vector<32x256xf32>
    %214 = vector.extract_strided_slice %134 {offsets = [128, 0], sizes = [32, 1], strides = [1, 1]} : vector<160x1xf32> to vector<32x1xf32>
    %215 = vector.broadcast %214 : vector<32x1xf32> to vector<32x256xf32>
    %216 = arith.mulf %127, %215 : vector<32x256xf32>
    %217 = vector.extract_strided_slice %137 {offsets = [128, 0], sizes = [32, 1], strides = [1, 1]} : vector<160x1xf32> to vector<32x1xf32>
    %218 = vector.broadcast %217 : vector<32x1xf32> to vector<32x256xf32>
    %219 = arith.mulf %130, %218 : vector<32x256xf32>
    %220 = arith.minimumf %216, %219 : vector<32x256xf32>
    %cst_54 = arith.constant 1.73205078 : f32
    %221 = vector.broadcast %cst_54 : f32 to vector<32x256xf32>
    %222 = arith.mulf %221, %213 : vector<32x256xf32>
    %cst_55 = arith.constant 1.000000e+00 : f32
    %223 = vector.broadcast %cst_55 : f32 to vector<32x256xf32>
    %224 = arith.addf %223, %222 : vector<32x256xf32>
    %225 = arith.mulf %224, %220 : vector<32x256xf32>
    %226 = arith.truncf %225 : vector<32x256xf32> to vector<32x256xbf16>
    %c160 = arith.constant 160 : index
    %c0_56 = arith.constant 0 : index
    %227 = vector.load %arg7[%c160, %c0_56] : memref<192x256xbf16, #tpu.memory_space<vmem>>, vector<32x256xbf16>
    tpu.vector_store %arg7[%c160, %c0_56], %226 {strides = array<i32>} : memref<192x256xbf16, #tpu.memory_space<vmem>>, vector<32x256xbf16>,
    %c0_57 = arith.constant 0 : index
    %c0_58 = arith.constant 0 : index
    %228 = vector.load %arg5[%c0_57, %c0_58] : memref<8x192xbf16, #tpu.memory_space<vmem>>, vector<8x192xbf16>
    %c0_59 = arith.constant 0 : index
    %c0_60 = arith.constant 0 : index
    %229 = vector.load %arg7[%c0_59, %c0_60] : memref<192x256xbf16, #tpu.memory_space<vmem>>, vector<192x256xbf16>
    %cst_61 = arith.constant dense<0.000000e+00> : vector<8x256xf32>
    %230 = tpu.matmul %228, %229, %cst_61 {dimension_numbers = #tpu.dot_dimension_numbers<[1], [0], [0], [1], [0, 0, 1, 1], [], []>} : vector<8x192xbf16>, vector<192x256xbf16>, vector<8x256xf32> -> vector<8x256xf32>
    %c0_62 = arith.constant 0 : index
    %c0_63 = arith.constant 0 : index
    %231 = vector.load %arg6[%c0_62, %c0_63] : memref<8x256xf32, #tpu.memory_space<vmem>>, vector<8x256xf32>
    tpu.vector_store %arg6[%c0_62, %c0_63], %230 {strides = array<i32>} : memref<8x256xf32, #tpu.memory_space<vmem>>, vector<8x256xf32>,
    return
  }
  func.func @transform_0(%arg0: i32) -> (i32, i32) {
    %c0_i32 = arith.constant 0 : i32
    %c0_i32_0 = arith.constant 0 : i32
    return %c0_i32, %arg0 : i32, i32
  }
  func.func @transform_1(%arg0: i32) -> (i32, i32) {
    %c0_i32 = arith.constant 0 : i32
    %c0_i32_0 = arith.constant 0 : i32
    %c0_i32_1 = arith.constant 0 : i32
    return %c0_i32, %c0_i32_0 : i32, i32
  }
  func.func @transform_2(%arg0: i32) -> (i32, i32) {
    %c0_i32 = arith.constant 0 : i32
    %c0_i32_0 = arith.constant 0 : i32
    %c0_i32_1 = arith.constant 0 : i32
    return %c0_i32, %c0_i32_0 : i32, i32
  }
  func.func @transform_3(%arg0: i32) -> (i32, i32) {
    %c0_i32 = arith.constant 0 : i32
    %c0_i32_0 = arith.constant 0 : i32
    %c0_i32_1 = arith.constant 0 : i32
    return %c0_i32, %c0_i32_0 : i32, i32
  }
  func.func @transform_4(%arg0: i32) -> (i32, i32) {
    %c0_i32 = arith.constant 0 : i32
    %c0_i32_0 = arith.constant 0 : i32
    %c0_i32_1 = arith.constant 0 : i32
    return %c0_i32, %c0_i32_0 : i32, i32
  }
  func.func @transform_5(%arg0: i32) -> (i32, i32) {
    %c0_i32 = arith.constant 0 : i32
    %c0_i32_0 = arith.constant 0 : i32
    return %c0_i32, %arg0 : i32, i32
  }
}

</mosaic_0001>

<bundles_post_ra>
// kernel: tpu_custom_call.1
= control target key start
LH: loop header
LB: loop body
LE: loop exit
PB: predicated region body
PF: predicated region fallthrough
CT: control target
= control target key end

     0   :  { %10 = vsyncpa [#allocation5], 0  ;;  %s3087_s0 = inlined_call_operand.vmem [shape: f32[16,512], index: 0, kind: input, shape index: {}]   ;;  %s3088_s1 = inlined_call_operand.vmem [shape: f32[80,1], index: 1, kind: input, shape index: {}]   ;;  %s3089_s2 = inlined_call_operand.vmem [shape: bf16[32,96], index: 2, kind: input, shape index: {}]   ;;  %s3090_s3 = inlined_call_operand.vmem [shape: f32[160,1], index: 3, kind: input, shape index: {}]   ;;  %s3091_s4 = inlined_call_operand.vmem [shape: bf16[8,192], index: 4, kind: input, shape index: {}]   ;;  %s3092_s5 = inlined_call_operand.hbm [shape: f32[8,512], index: 5, kind: output, shape index: {}]  }
   0x1   :  { %12 = vsyncpa [#allocation5 + $0x1], 0  ;;  %s2238_s18 = smov 0   ;;  %s2240_s19 = smov 0  }
   0x2   :  { %s2242_s20 = smov 0   ;;  %s2244_s21 = smov 0  }
   0x3 LB: > { %s1855_s22 = sadd.s32 4294967295, %s2204_s21   ;;  %s1856_s23 = sadd.s32 4294967294, %s2204_s21   ;;  %s2204_s21 = sphi %s2244_s21, %s3170_s21   ;;  %s2200_s20 = sphi %s2242_s20, %s3169_s20   ;;  %s2196_s19 = sphi %s2240_s19, %s3168_s19   ;;  %s2192_s18 = sphi %s2238_s18, %s3167_s18  }
   0x4   : > { %s2261_s24 = sadd.s32 1, %s2204_s21   ;;  %s25_s25 = sadd.s32 1, %s2200_s20 }
   0x5   : > { %s22_s26 = ssub.s32 %s2204_s21, %s2261_s24  ;;  %p32_p0 = scmp.ne.s32.totalorder %s2200_s20, %s2196_s19 }
   0x6   : > { %p23_p1 = scmp.eq.s32.totalorder %s22_s26, 0  ;;  %p33_p2 = scmp.eq.s32.totalorder %s2204_s21, 0 }
   0x7   : > { %p146_p3 = scmp.eq.s32.totalorder %s1855_s22, 1  ;;  %p151_p4 = scmp.ne.s32.totalorder %s2196_s19, %s2192_s18 }
   0x8   : > { %s2274_s27 = scalar_select %p23_p1, %s2200_s20, %s25_s25  }
   0x9   : > { %p34_p5 = por %p33_p2, %p32_p0  ;;  %p2276_p6 = por %p146_p3, %p32_p0 }
   0xa   : > { %p152_p7 = scmp.eq.s32.totalorder %s1856_s23, 1  ;;  %p1858_p9 = scmp.ge.s32.totalorder %s2204_s21, 2 }
   0xc   : > { %p2280_p8 = por %p152_p7, %p151_p4  ;;  %180 = sbr.rel (%p1858_p9) target bundleno = 26 (0x1a), region = 32 }
  0x13   : > { %183 = sbr.rel (!%p34_p5) target bundleno = 26 (0x1a), region = 36  ;;  %s185_s30 = sand.u32 (%p34_p5), 1, %s2200_s20  }
  0x14   : > { %s1877_s6 = sshll.u32 (%p34_p5), %s2204_s21, 4  ;;  %s1859_s7 = sshll.u32 (%p34_p5), %s185_s30, 5 }
  0x15   : > { %s190_s10 = scalar_lea.vmem (%p34_p5), %s3087_s0, %s1877_s6  ;;  %s187_s11 = scalar_lea.vmem (%p34_p5), [#allocation3], %s1859_s7 }
  0x16   : > { %v203_v0 = vld [vmem:[%s190_s10] sm:$0xff] (%p34_p5)  ;;  %v205_v1 = vld [vmem:[%s190_s10 + $0x8] sm:$0xff] (%p34_p5) }
  0x17   : > { %v207_v2 = vld [vmem:[%s190_s10 + $0x20] sm:$0xff] (%p34_p5)  ;;  %204 = vst [vmem:[%s187_s11] sm:$0xff] (%p34_p5), %v203_v0  ;;  %206 = vst [vmem:[%s187_s11 + $0x8] sm:$0xff] (%p34_p5), %v205_v1  ;;  %v209_v3 = vld [vmem:[%s190_s10 + $0x28] sm:$0xff] (%p34_p5) }
  0x18   : > { %208 = vst [vmem:[%s187_s11 + $0x10] sm:$0xff] (%p34_p5), %v207_v2  ;;  %210 = vst [vmem:[%s187_s11 + $0x18] sm:$0xff] (%p34_p5), %v209_v3 }
  0x1a PF: > { %p1862_p10 = scmp.ge.s32.totalorder %s2204_s21, 1  ;;  %p215_p11 = scmp.lt.s32.totalorder %s2204_s21, 3 }
  0x1c   : > { %p216_p12 = pnand %p1862_p10, %p215_p11 }
  0x1e   : > { %219 = sbr.rel (%p216_p12) target bundleno = 805 (0x325), region = 59 }
  0x25   : > { %v308_v4 = vld [vmem:[%s3088_s1] sm:$0xff]  ;;  %v309_v5 = vld [vmem:[%s3088_s1 + $0x8] sm:$0xff]  ;;  %v311_v6 = vld [vmem:[%s3088_s1 + $0x18] sm:$0xff]  ;;  %v2206_v7 = vmov 0   ;;  %s2328_s16 = sand.u32 1, %s2196_s19   ;;  %vm734_vm0 = vcmask 785408  }
  0x26   : > { %1919 = vset.pattern.permute.xlu0 %v2206_v7  ;;  %v318_v8 = vmul.f32 -1.7320508, %v308_v4  ;;  %v348_v9 = vmul.f32 1.7320508, %v308_v4  ;;  %v319_v10 = vmul.f32 -1.7320508, %v309_v5  ;;  %1920 = vset.pattern.permute.xlu1 %v2206_v7 }
  0x27   : > { %380 = vperm.xlu0 %1919, %v308_v4   ;;  %v349_v11 = vmul.f32 1.7320508, %v309_v5  ;;  %451 = vperm.xlu1 %1920, %v311_v6   ;;  %v310_v15 = vld [vmem:[%s3088_s1 + $0x10] sm:$0xff]  ;;  %v321_v19 = vmul.f32 -1.7320508, %v311_v6  ;;  %v312_v22 = vld [vmem:[%s3088_s1 + $0x20] sm:$0xff] }
  0x28   : > { %v328_v12 = vmul.f32 1.442695, %v318_v8  ;;  %v358_v13 = vmul.f32 1.442695, %v348_v9  ;;  %v330_v14 = vmul.f32 1.442695, %v319_v10  ;;  %773 = vmatprep.mubr.bf16.mxu0 %v2206_v7 }
  0x29   : > { %v360_v16 = vmul.f32 1.442695, %v349_v11  ;;  %v320_v17 = vmul.f32 -1.7320508, %v310_v15  ;;  %v350_v18 = vmul.f32 1.7320508, %v310_v15 }
  0x2a   : > { %1925 = vpow2.f32 %v328_v12  ;;  %v334_v23 = vmul.f32 1.442695, %v321_v19  ;;  %v351_v24 = vmul.f32 1.7320508, %v311_v6  ;;  %v322_v25 = vmul.f32 -1.7320508, %v312_v22 }
  0x2b   : > { %1927 = vpow2.f32 %v358_v13  ;;  %385 = vperm.xlu0 %1919, %v309_v5   ;;  %v332_v20 = vmul.f32 1.442695, %v320_v17  ;;  %v362_v21 = vmul.f32 1.442695, %v350_v18  ;;  %v313_v29 = vld [vmem:[%s3088_s1 + $0x28] sm:$0xff]  ;;  %v314_v37 = vld [vmem:[%s3088_s1 + $0x30] sm:$0xff] }
  0x2c   : > { %1929 = vpow2.f32 %v330_v14  ;;  %v364_v27 = vmul.f32 1.442695, %v351_v24  ;;  %v336_v31 = vmul.f32 1.442695, %v322_v25  ;;  %v352_v32 = vmul.f32 1.7320508, %v312_v22 }
  0x2d   : > { %1931 = vpow2.f32 %v360_v16  ;;  %v323_v33 = vmul.f32 -1.7320508, %v313_v29  ;;  %v353_v40 = vmul.f32 1.7320508, %v313_v29  ;;  %v324_v42 = vmul.f32 -1.7320508, %v314_v37 }
  0x2e   : > { %1933 = vpow2.f32 %v332_v20  ;;  %v366_v36 = vmul.f32 1.442695, %v352_v32  ;;  %v315_v44 = vld [vmem:[%s3088_s1 + $0x38] sm:$0xff]  ;;  %v354_v47 = vmul.f32 1.7320508, %v314_v37  ;;  %v316_v51 = vld [vmem:[%s3088_s1 + $0x40] sm:$0xff] }
  0x2f   : > { %446 = vperm.xlu0 %1919, %v310_v15   ;;  %1935 = vpow2.f32 %v362_v21  ;;  %v338_v39 = vmul.f32 1.442695, %v323_v33  ;;  %v368_v43 = vmul.f32 1.442695, %v353_v40  ;;  %v340_v46 = vmul.f32 1.442695, %v324_v42 }
  0x30   : > { %1937 = vpow2.f32 %v334_v23  ;;  %v325_v49 = vmul.f32 -1.7320508, %v315_v44  ;;  %v370_v50 = vmul.f32 1.442695, %v354_v47  ;;  %v355_v54 = vmul.f32 1.7320508, %v315_v44 }
  0x31   : > { %1939 = vpow2.f32 %v364_v27  ;;  %v326_v56 = vmul.f32 -1.7320508, %v316_v51  ;;  %v317_v58 = vld [vmem:[%s3088_s1 + $0x48] sm:$0xff]  ;;  %v356_v61 = vmul.f32 1.7320508, %v316_v51  ;;  %s1863_s17 = sshll.u32 %s2328_s16, 5 }
  0x32   : > { %1941 = vpow2.f32 %v336_v31  ;;  %v342_v53 = vmul.f32 1.442695, %v325_v49  ;;  %v372_v57 = vmul.f32 1.442695, %v355_v54  ;;  %v327_v63 = vmul.f32 -1.7320508, %v317_v58 }
  0x33   : > { %1943 = vpow2.f32 %v366_v36  ;;  %v344_v60 = vmul.f32 1.442695, %v326_v56  ;;  %v374_v0 = vmul.f32 1.442695, %v356_v61  ;;  %v357_v3 = vmul.f32 1.7320508, %v317_v58 }
  0x34   : > { %v1926_v26 = vpop.eup %1925  ;;  %1945 = vpow2.f32 %v338_v39  ;;  %v346_v2 = vmul.f32 1.442695, %v327_v63  ;;  %v898_v4 = vld [vmem:[%s3090_s3] sm:$0xff]  ;;  %v899_v10 = vld [vmem:[%s3090_s3 + $0x8] sm:$0xff]  ;;  %s224_s6 = scalar_lea.vmem [#allocation3], %s1863_s17  ;;  %v900_v20 = vld [vmem:[%s3090_s3 + $0x10] sm:$0xff] }
  0x35   : > { %v1928_v28 = vpop.eup %1927  ;;  %398 = vperm.xlu1 %1920, %v1926_v26   ;;  %1947 = vpow2.f32 %v368_v43  ;;  %v376_v6 = vmul.f32 1.442695, %v357_v3  ;;  %v918_v8 = vmul.f32 -1.7320508, %v898_v4  ;;  %v2337_v11 = vld [vmem:[%s224_s6 + $0x8] sm:$0xff]  ;;  %v2339_v15 = vld [vmem:[%s224_s6 + $0x18] sm:$0xff] }
  0x36   : > { %v1930_v30 = vpop.eup %1929  ;;  %412 = vperm.xlu0 %1919, %v1928_v28   ;;  %1949 = vpow2.f32 %v340_v46  ;;  %v978_v12 = vmul.f32 1.7320508, %v898_v4  ;;  %v919_v16 = vmul.f32 -1.7320508, %v899_v10  ;;  %v2341_v17 = vld [vmem:[%s224_s6] sm:$0xff]  ;;  %v2343_v18 = vld [vmem:[%s224_s6 + $0x10] sm:$0xff] }
  0x37   : > { %v1932_v34 = vpop.eup %1931  ;;  %1951 = vpow2.f32 %v370_v50  ;;  %v938_v14 = vmul.f32 1.442695, %v918_v8  ;;  %v257_v19 = vsub.f32 0.0, %v2337_v11  ;;  %v259_v21 = vsub.f32 0.0, %v2339_v15  ;;  %v901_v33 = vld [vmem:[%s3090_s3 + $0x18] sm:$0xff]  ;;  %v902_v47 = vld [vmem:[%s3090_s3 + $0x20] sm:$0xff] }
  0x38   : > { %v1934_v35 = vpop.eup %1933  ;;  %1953 = vpow2.f32 %v342_v53  ;;  %v998_v23 = vmul.f32 1.442695, %v978_v12  ;;  %v256_v24 = vsub.f32 0.0, %v2341_v17  ;;  %v940_v25 = vmul.f32 1.442695, %v919_v16  ;;  %s1864_s6 = sshll.u32 %s2328_s16, 4 }
  0x39   : > { %403 = vperm.xlu1 %1920, %v1930_v30   ;;  %v1936_v38 = vpop.eup %1935  ;;  %1955 = vpow2.f32 %v372_v57  ;;  %v258_v26 = vsub.f32 0.0, %v2343_v18  ;;  %v920_v28 = vmul.f32 -1.7320508, %v900_v20  ;;  %v266_v30 = vmul.f32 1.442695, %v259_v21  ;;  %s248_s7 = scalar_lea.vmem [#allocation4], %s1864_s6 }
  0x3a   : > { %464 = vperm.xlu0 %1919, %v1934_v35   ;;  %v1938_v41 = vpop.eup %1937  ;;  %1957 = vpow2.f32 %v344_v60  ;;  %v979_v31 = vmul.f32 1.7320508, %v899_v10  ;;  %v260_v32 = vmul.f32 1.442695, %v256_v24  ;;  %v921_v39 = vmul.f32 -1.7320508, %v901_v33 }
  0x3b   : > { %v1940_v45 = vpop.eup %1939  ;;  %1959 = vpow2.f32 %v374_v0  ;;  %v942_v36 = vmul.f32 1.442695, %v920_v28  ;;  %v982_v61 = vmul.f32 1.7320508, %v902_v47  ;;  %vm1729_vm1 = vcmask 523264   ;;  %s1791_s8 = sshll.u32 %s248_s7, 4  ;;  %s3040_s8 = int_to_ptr.vmem [resolvable:$true] %s1791_s8 }
  0x3c   : > { %v1942_v48 = vpop.eup %1941  ;;  %1961 = vpow2.f32 %v346_v2  ;;  %v944_v43 = vmul.f32 1.442695, %v921_v39  ;;  %s1878_s9 = sshll.u32 %s1855_s22, 8  ;;  %s1777_s13 = scalar_lea.sflag [#allocation5], %s2328_s16 }
  0x3d   : > { %417 = vperm.xlu1 %1920, %v1932_v34   ;;  %v1944_v52 = vpop.eup %1943  ;;  %1963 = vpow2.f32 %v376_v6  ;;  %v264_v34 = vmul.f32 1.442695, %v258_v26  ;;  %v1006_v2 = vmul.f32 1.442695, %v982_v61  ;;  %v910_v61 = vld [vmem:[%s3090_s3 + $0x60] sm:$0xff]  ;;  %s3045_s12 = scalar_lea.hbm %s3092_s5, %s1878_s9  ;;  %s2142_s14 = scalar_lea.vmem %s3040_s8, 256 }
  0x3e   : > { %478 = vperm.xlu0 %1919, %v1936_v38   ;;  %v1946_v55 = vpop.eup %1945  ;;  %1965 = vpow2.f32 %v938_v14  ;;  %v1000_v38 = vmul.f32 1.442695, %v979_v31  ;;  %v906_v31 = vld [vmem:[%s3090_s3 + $0x40] sm:$0xff]  ;;  %p2143_p13 = scmp.ne.s32.totalorder %s3040_s8, %s2142_s14  ;;  %s2207_s22 = smov [#allocation4]  }
  0x3f   : > { %v1948_v59 = vpop.eup %1947  ;;  %1967 = vpow2.f32 %v998_v23  ;;  %s2146_s15 = sshll.u32 %s2207_s22, 4  ;;  %s2147_s15 = int_to_ptr.vmem [resolvable:$false] %s2146_s15 }
  0x40   : > { %v1950_v62 = vpop.eup %1949  ;;  %1969 = vpow2.f32 %v940_v25  ;;  %p2144_p0 = pnand %p2143_p13, %p2276_p6  ;;  %s2148_s17 = scalar_lea.vmem %s2147_s15, 512 }
  0x41   : > { %469 = vperm.xlu1 %1920, %v1938_v41   ;;  %v1952_v1 = vpop.eup %1951  ;;  %v981_v41 = vmul.f32 1.7320508, %v901_v33  ;;  %p2149_p2 = scmp.lt.s32.totalorder %s3040_s8, %s2147_s15  ;;  %p2150_p3 = scmp.lt.s32.totalorder %s2148_s17, %s2142_s14 }
  0x42   : > { %512 = vperm.xlu0 %1919, %v312_v22   ;;  %v1954_v5 = vpop.eup %1953  ;;  %p2145_p1 = pneg %p2144_p0 }
  0x43   : > { %v1956_v9 = vpop.eup %1955  ;;  %p2151_p4 = por %p2150_p3, %p2149_p2 }
  0x44   : > { %v1958_v13 = vpop.eup %1957 }
  0x45   : > { %483 = vperm.xlu1 %1920, %v1940_v45   ;;  %v1960_v22 = vpop.eup %1959  ;;  %v1004_v45 = vmul.f32 1.442695, %v981_v41  ;;  %v908_v41 = vld [vmem:[%s3090_s3 + $0x50] sm:$0xff]  ;;  %p2152_p5 = pnand %p2151_p4, %p2145_p1 }
  0x46   : > { %530 = vperm.xlu0 %1919, %v1942_v48   ;;  %v1962_v27 = vpop.eup %1961 }
  0x47   : > { %v1964_v35 = vpop.eup %1963 }
  0x48   : > { %v1966_v42 = vpop.eup %1965 }
  0x49   : > { %517 = vperm.xlu1 %1920, %v313_v29   ;;  %v262_v29 = vmul.f32 1.442695, %v257_v19 }
  0x4a   : > { %544 = vperm.xlu0 %1919, %v1944_v52   ;;  %v922_v52 = vmul.f32 -1.7320508, %v902_v47 }
  0x4b   : > { %1971 = vpow2.f32 %v262_v29 }
  0x4c   : > { %1973 = vpow2.f32 %v266_v30  ;;  %v946_v60 = vmul.f32 1.442695, %v922_v52  ;;  %v988_v52 = vmul.f32 1.7320508, %v908_v41 }
  0x4d   : > { %535 = vperm.xlu1 %1920, %v1946_v55   ;;  %1975 = vpow2.f32 %v260_v32 }
  0x4e   : > { %578 = vperm.xlu0 %1919, %v314_v37   ;;  %v980_v37 = vmul.f32 1.7320508, %v900_v20  ;;  %1977 = vpow2.f32 %v264_v34 }
  0x4f   : > { %1979 = vpow2.f32 %v942_v36 }
  0x50   : > { %v1002_v40 = vmul.f32 1.442695, %v980_v37  ;;  %1981 = vpow2.f32 %v1000_v38  ;;  %v907_v37 = vld [vmem:[%s3090_s3 + $0x48] sm:$0xff] }
  0x51   : > { %549 = vperm.xlu1 %1920, %v1948_v59  }
  0x52   : > { %596 = vperm.xlu0 %1919, %v1950_v62   ;;  %1983 = vpow2.f32 %v1002_v40  ;;  %v904_v62 = vld [vmem:[%s3090_s3 + $0x30] sm:$0xff]  ;;  %v986_v40 = vmul.f32 1.7320508, %v906_v31 }
  0x53   : > { %1985 = vpow2.f32 %v944_v43  ;;  %v924_v3 = vmul.f32 -1.7320508, %v904_v62  ;;  %v927_v43 = vmul.f32 -1.7320508, %v907_v37 }
  0x54   : > { %1987 = vpow2.f32 %v1004_v45  ;;  %v1014_v45 = vmul.f32 1.442695, %v986_v40 }
  0x55   : > { %583 = vperm.xlu1 %1920, %v315_v44   ;;  %v1968_v44 = vpop.eup %1967  ;;  %v950_v12 = vmul.f32 1.442695, %v924_v3 }
  0x56   : > { %610 = vperm.xlu0 %1919, %v1952_v1   ;;  %v1970_v46 = vpop.eup %1969 }
  0x57   : > { %v1972_v48 = vpop.eup %1971 }
  0x58   : > { %v1974_v49 = vpop.eup %1973  ;;  %v269_v50 = vadd.f32 1.0, %v1972_v48  ;;  %v987_v48 = vmul.f32 1.7320508, %v907_v37 }
  0x59   : > { %601 = vperm.xlu1 %1920, %v1954_v5   ;;  %v271_v53 = vadd.f32 1.0, %v1974_v49  ;;  %v909_v49 = vld [vmem:[%s3090_s3 + $0x58] sm:$0xff] }
  0x5a   : > { %644 = vperm.xlu0 %1919, %v316_v51   ;;  %v1976_v51 = vpop.eup %1975  ;;  %1989 = vrcp.f32 %v269_v50 }
  0x5b   : > { %v1978_v54 = vpop.eup %1977  ;;  %v268_v55 = vadd.f32 1.0, %v1976_v51  ;;  %1991 = vrcp.f32 %v271_v53  ;;  %v1016_v53 = vmul.f32 1.442695, %v987_v48 }
  0x5c   : > { %v1980_v56 = vpop.eup %1979  ;;  %v270_v57 = vadd.f32 1.0, %v1978_v54  ;;  %v929_v54 = vmul.f32 -1.7320508, %v909_v49 }
  0x5d   : > { %615 = vperm.xlu1 %1920, %v1956_v9   ;;  %1993 = vrcp.f32 %v268_v55  ;;  %v1982_v59 = vpop.eup %1981  ;;  %v905_v9 = vld [vmem:[%s3090_s3 + $0x38] sm:$0xff]  ;;  %v1018_v55 = vmul.f32 1.442695, %v988_v52 }
  0x5e   : > { %662 = vperm.xlu0 %1919, %v1958_v13   ;;  %1995 = vrcp.f32 %v270_v57  ;;  %v1984_v63 = vpop.eup %1983  ;;  %v984_v13 = vmul.f32 1.7320508, %v904_v62  ;;  %v985_v30 = vmul.f32 1.7320508, %v905_v9  ;;  %v960_v57 = vmul.f32 1.442695, %v929_v54 }
  0x5f   : > { %v1986_v1 = vpop.eup %1985  ;;  %1997 = vpow2.f32 %v946_v60  ;;  %v285_v60 = vmul.f32 1.7320508, %v2337_v11  ;;  %v2429_v54 = vld [vmem:[%s3090_s3 + $0x90] sm:$0xff] }
  0x60   : > { %1999 = vpow2.f32 %v1006_v2  ;;  %v1010_v26 = vmul.f32 1.442695, %v984_v13  ;;  %v298_v13 = vmul.f32 -1.7320508, %v2343_v18 }
  0x61   : > { %649 = vperm.xlu1 %1920, %v317_v58   ;;  %v903_v58 = vld [vmem:[%s3090_s3 + $0x28] sm:$0xff] }
  0x62   : > { %676 = vperm.xlu0 %1919, %v1960_v22   ;;  %v923_v0 = vmul.f32 -1.7320508, %v903_v58  ;;  %v983_v6 = vmul.f32 1.7320508, %v903_v58  ;;  %v925_v22 = vmul.f32 -1.7320508, %v905_v9 }
  0x64   : > { %v948_v5 = vmul.f32 1.442695, %v923_v0  ;;  %v1008_v21 = vmul.f32 1.442695, %v983_v6  ;;  %v952_v29 = vmul.f32 1.442695, %v925_v22 }
  0x65   : > { %667 = vperm.xlu1 %1920, %v1962_v27   ;;  %v296_v0 = vmul.f32 -1.7320508, %v2341_v17  ;;  %v286_v6 = vmul.f32 1.7320508, %v2343_v18 }
  0x66   : > { %1040 = vperm.xlu0 %1919, %v898_v4   ;;  %v1988_v4 = vpop.eup %1987  ;;  %2001 = vpow2.f32 %v948_v5  ;;  %v290_v5 = vmul.f32 1.442695, %v285_v60 }
  0x67   : > { %v1990_v8 = vpop.eup %1989  ;;  %2003 = vpow2.f32 %v950_v12  ;;  %v292_v22 = vmul.f32 1.442695, %v286_v6 }
  0x68   : > { %v277_v14 = vmul.f32 %v1990_v8, %v2337_v11  ;;  %2005 = vpow2.f32 %v1008_v21  ;;  %v990_v21 = vmul.f32 1.7320508, %v910_v61 }
  0x69   : > { %681 = vperm.xlu1 %1920, %v1964_v35   ;;  %2007 = vpow2.f32 %v1010_v26  ;;  %v926_v35 = vmul.f32 -1.7320508, %v906_v31 }
  0x6a   : > { %1050 = vperm.xlu0 %1919, %v900_v20   ;;  %2009 = vpow2.f32 %v952_v29 }
  0x6b   : > { %v954_v39 = vmul.f32 1.442695, %v926_v35 }
  0x6d   : > { %1045 = vperm.xlu1 %1920, %v899_v10   ;;  %v1992_v10 = vpop.eup %1991 }
  0x6e   : > { %1076 = vperm.xlu0 %1919, %v1966_v42   ;;  %v1994_v16 = vpop.eup %1993  ;;  %v279_v19 = vmul.f32 %v1992_v10, %v2339_v15  ;;  %v287_v10 = vmul.f32 1.7320508, %v2339_v15 }
  0x6f   : > { %v1996_v20 = vpop.eup %1995  ;;  %v276_v23 = vmul.f32 %v1994_v16, %v2341_v17 }
  0x70   : > { %v281_v24 = vpack.c.bf16 %v279_v19, %v277_v14  ;;  %v278_v25 = vmul.f32 %v1996_v20, %v2343_v18  ;;  %v1998_v28 = vpop.eup %1997  ;;  %v2396_v14 = vld [vmem:[%s3090_s3 + $0x68] sm:$0xff]  ;;  %v294_v26 = vmul.f32 1.442695, %v287_v10 }
  0x71   : > { %1055 = vperm.xlu1 %1920, %v901_v33   ;;  %v2000_v32 = vpop.eup %1999  ;;  %v1012_v33 = vmul.f32 1.442695, %v985_v30  ;;  %v991_v35 = vmul.f32 1.7320508, %v2396_v14 }
  0x72   : > { %1104 = vperm.xlu0 %1919, %v1968_v44   ;;  %741 = vmatprep.subr.bf16.mxu0 %v281_v24  ;;  %v280_v27 = vpack.c.bf16 %v278_v25, %v276_v23  ;;  %v2002_v34 = vpop.eup %2001  ;;  %v299_v23 = vmul.f32 -1.7320508, %v2339_v15  ;;  %v912_v24 = vld [vmem:[%s3090_s3 + $0x70] sm:$0xff] }
  0x73   : > { %v2004_v36 = vpop.eup %2003  ;;  %2011 = vpow2.f32 %v1012_v33  ;;  %v992_v40 = vmul.f32 1.7320508, %v912_v24 }
  0x74   : > { %742 = vmatpush1.bf16.msra.mxu0 %v280_v27  ;;  %v2006_v38 = vpop.eup %2005  ;;  %2013 = vpow2.f32 %v954_v39  ;;  %v931_v27 = vmul.f32 -1.7320508, %v2396_v14  ;;  %v306_v33 = vmul.f32 1.442695, %v299_v23 }
  0x75   : > { %1081 = vperm.xlu1 %1920, %v1970_v46   ;;  %v2008_v42 = vpop.eup %2007  ;;  %v928_v46 = vmul.f32 -1.7320508, %v908_v41  ;;  %2015 = vpow2.f32 %v1014_v45  ;;  %v1026_v52 = vmul.f32 1.442695, %v992_v40 }
  0x76   : > { %1086 = vperm.xlu0 %1919, %v1980_v56   ;;  %v2010_v44 = vpop.eup %2009 }
  0x77   : > { %v958_v51 = vmul.f32 1.442695, %v928_v46  ;;  %v1024_v46 = vmul.f32 1.442695, %v991_v35 }
  0x79   : > { %1109 = vperm.xlu1 %1920, %v1982_v59   ;;  %v284_v59 = vmul.f32 1.7320508, %v2341_v17 }
  0x7a   : > { %1114 = vperm.xlu0 %1919, %v1984_v63  }
  0x7b   : > { %v288_v3 = vmul.f32 1.442695, %v284_v59 }
  0x7d   : > { %1091 = vperm.xlu1 %1920, %v1986_v1   ;;  %v2012_v50 = vpop.eup %2011  ;;  %v297_v1 = vmul.f32 -1.7320508, %v2337_v11 }
  0x7e   : > { %1172 = vperm.xlu0 %1919, %v902_v47   ;;  %v956_v47 = vmul.f32 1.442695, %v927_v43  ;;  %v2014_v56 = vpop.eup %2013 }
  0x7f   : > { %v302_v12 = vmul.f32 1.442695, %v297_v1 }
  0x80   : > { %2017 = vpow2.f32 %v956_v47  ;;  %v2418_v47 = vld [vmem:[%s3090_s3 + $0x80] sm:$0xff] }
  0x81   : > { %1119 = vperm.xlu1 %1920, %v1988_v4   ;;  %2019 = vpow2.f32 %v958_v51  ;;  %v930_v4 = vmul.f32 -1.7320508, %v910_v61 }
  0x82   : > { %1182 = vperm.xlu0 %1919, %v904_v62   ;;  %2021 = vpow2.f32 %v1016_v53  ;;  %v2016_v62 = vpop.eup %2015 }
  0x83   : > { %2023 = vpow2.f32 %v1018_v55  ;;  %v962_v20 = vmul.f32 1.442695, %v930_v4  ;;  %v936_v4 = vmul.f32 -1.7320508, %v2429_v54 }
  0x84   : > { %2025 = vpow2.f32 %v960_v57  ;;  %v934_v57 = vmul.f32 -1.7320508, %v2418_v47 }
  0x85   : > { %1177 = vperm.xlu1 %1920, %v903_v58   ;;  %v989_v58 = vmul.f32 1.7320508, %v909_v49 }
  0x86   : > { %1208 = vperm.xlu0 %1919, %v1998_v28   ;;  %v304_v28 = vmul.f32 1.442695, %v298_v13  ;;  %v970_v10 = vmul.f32 1.442695, %v934_v57 }
  0x87   : > { %v1020_v63 = vmul.f32 1.442695, %v989_v58  ;;  %v994_v58 = vmul.f32 1.7320508, %v2418_v47 }
  0x89   : > { %1187 = vperm.xlu1 %1920, %v905_v9   ;;  %2027 = vpow2.f32 %v1020_v63  ;;  %v300_v9 = vmul.f32 1.442695, %v296_v0  ;;  %v2438_v63 = vld [vmem:[%s3090_s3 + $0x88] sm:$0xff] }
  0x8a   : > { %1236 = vperm.xlu0 %1919, %v2000_v32   ;;  %v2018_v2 = vpop.eup %2017  ;;  %2029 = vpow2.f32 %v288_v3  ;;  %v932_v32 = vmul.f32 -1.7320508, %v912_v24  ;;  %v935_v13 = vmul.f32 -1.7320508, %v2438_v63  ;;  %v995_v35 = vmul.f32 1.7320508, %v2438_v63 }
  0x8b   : > { %v2020_v8 = vpop.eup %2019  ;;  %2031 = vpow2.f32 %v290_v5 }
  0x8c   : > { %v2022_v16 = vpop.eup %2021  ;;  %2033 = vpow2.f32 %v300_v9  ;;  %v966_v39 = vmul.f32 1.442695, %v932_v32 }
  0x8d   : > { %1213 = vperm.xlu1 %1920, %v2002_v34   ;;  %v2024_v25 = vpop.eup %2023  ;;  %2035 = vpow2.f32 %v302_v12  ;;  %v964_v34 = vmul.f32 1.442695, %v931_v27  ;;  %v2449_v12 = vmul.f32 1.442695, %v994_v58 }
  0x8e   : > { %1218 = vperm.xlu0 %1919, %v2004_v36   ;;  %v2026_v29 = vpop.eup %2025  ;;  %2037 = vpow2.f32 %v962_v20  ;;  %v913_v36 = vld [vmem:[%s3090_s3 + $0x78] sm:$0xff] }
  0x8f   : > { %2039 = vpow2.f32 %v292_v22  ;;  %v993_v53 = vmul.f32 1.7320508, %v913_v36 }
  0x90   : > { %2041 = vpow2.f32 %v294_v26  ;;  %v2458_v26 = vmul.f32 1.442695, %v936_v4  ;;  %v1032_v4 = vmul.f32 1.442695, %v995_v35 }
  0x91   : > { %1241 = vperm.xlu1 %1920, %v2006_v38   ;;  %2043 = vpow2.f32 %v304_v28  ;;  %v1028_v6 = vmul.f32 1.442695, %v993_v53 }
  0x92   : > { %1246 = vperm.xlu0 %1919, %v2008_v42   ;;  %v933_v42 = vmul.f32 -1.7320508, %v913_v36 }
  0x95   : > { %1223 = vperm.xlu1 %1920, %v2010_v44  }
  0x96   : > { %1304 = vperm.xlu0 %1919, %v906_v31   ;;  %v1022_v31 = vmul.f32 1.442695, %v990_v21 }
  0x98   : > { %2045 = vpow2.f32 %v1022_v31 }
  0x99   : > { %1251 = vperm.xlu1 %1920, %v2012_v50   ;;  %2047 = vpow2.f32 %v306_v33 }
  0x9a   : > { %1314 = vperm.xlu0 %1919, %v908_v41   ;;  %2049 = vpow2.f32 %v964_v34 }
  0x9b   : > { %2051 = vpow2.f32 %v966_v39 }
  0x9c   : > { %2053 = vpow2.f32 %v1024_v46 }
  0x9d   : > { %1309 = vperm.xlu1 %1920, %v907_v37   ;;  %v2028_v37 = vpop.eup %2027  ;;  %2055 = vpow2.f32 %v1026_v52 }
  0x9e   : > { %1340 = vperm.xlu0 %1919, %v2014_v56   ;;  %v2411_v43 = vpop.eup %2029  ;;  %v968_v56 = vmul.f32 1.442695, %v933_v42 }
  0x9f   : > { %v2420_v48 = vpop.eup %2031 }
  0xa0   : > { %v2424_v51 = vpop.eup %2033  ;;  %2057 = vpow2.f32 %v968_v56 }
  0xa1   : > { %1319 = vperm.xlu1 %1920, %v909_v49   ;;  %v2431_v55 = vpop.eup %2035  ;;  %2059 = vpow2.f32 %v1028_v6 }
  0xa2   : > { %1368 = vperm.xlu0 %1919, %v2016_v62   ;;  %v2038_v59 = vpop.eup %2037  ;;  %2061 = vpow2.f32 %v970_v10 }
  0xa3   : > { %v2440_v0 = vpop.eup %2039  ;;  %2063 = vpow2.f32 %v2449_v12 }
  0xa4   : > { %v2444_v5 = vpop.eup %2041 }
  0xa5   : > { %1345 = vperm.xlu1 %1920, %v2018_v2   ;;  %v2447_v9 = vpop.eup %2043 }
  0xa6   : > { %v381_v19 = vpop.permute.xlu0 %380  ;;  %1350 = vperm.xlu0 %1919, %v2020_v8   ;;  %v2407_v38 = vpop.permute.xlu1 %451  ;;  %v996_v8 = vmul.f32 1.7320508, %v2429_v54 }
  0xa7   : > { %v388_v44 = vsub.f32 %v2341_v17, %v381_v19  ;;  %v389_v45 = vsub.f32 %v2337_v11, %v381_v19  ;;  %v456_v20 = vsub.f32 %v2343_v18, %v2407_v38  ;;  %v457_v21 = vsub.f32 %v2339_v15, %v2407_v38 }
  0xa9   : > { %1373 = vperm.xlu1 %1920, %v2022_v16   ;;  %v392_v60 = vand.u32 2147483647, %v388_v44  ;;  %v2046_v16 = vpop.eup %2045  ;;  %v460_v39 = vand.u32 2147483647, %v456_v20  ;;  %v461_v40 = vand.u32 2147483647, %v457_v21 }
  0xaa   : > { %v386_v30 = vpop.permute.xlu0 %385  ;;  %1378 = vperm.xlu0 %1919, %v2024_v25   ;;  %v2456_v23 = vpop.eup %2047 }
  0xab   : > { %v390_v49 = vsub.f32 %v2343_v18, %v386_v30  ;;  %v391_v50 = vsub.f32 %v2339_v15, %v386_v30  ;;  %v428_v19 = vmul.f32 1.7320508, %v392_v60  ;;  %v2050_v27 = vpop.eup %2049 }
  0xad   : > { %1355 = vperm.xlu1 %1920, %v2026_v29   ;;  %v394_v1 = vand.u32 2147483647, %v390_v49  ;;  %v395_v2 = vand.u32 2147483647, %v391_v50 }
  0xae   : > { %1436 = vperm.xlu0 %1919, %v910_v61   ;;  %v2409_v41 = vpop.permute.xlu0 %446  ;;  %v393_v61 = vand.u32 2147483647, %v389_v45 }
  0xaf   : > { %v431_v25 = vmul.f32 1.7320508, %v395_v2  ;;  %v454_v33 = vsub.f32 %v2341_v17, %v2409_v41  ;;  %v455_v34 = vsub.f32 %v2337_v11, %v2409_v41  ;;  %v2473_v2 = vmul.f32 1.442695, %v996_v8  ;;  %v2480_v8 = vld [vmem:[%s3090_s3 + $0x98] sm:$0xff] }
  0xb1   : > { %1383 = vperm.xlu1 %1920, %v2028_v37   ;;  %v432_v37 = vadd.f32 1.0, %v428_v19  ;;  %v435_v52 = vadd.f32 1.0, %v431_v25  ;;  %v458_v58 = vand.u32 2147483647, %v454_v33 }
  0xb2   : > { %1446 = vperm.xlu0 %1919, %v912_v24   ;;  %v430_v24 = vmul.f32 1.7320508, %v394_v1 }
  0xb4   : > { %v399_v62 = vpop.permute.xlu1 %398  ;;  %v434_v50 = vadd.f32 1.0, %v430_v24 }
  0xb5   : > { %v413_v3 = vpop.permute.xlu0 %412  ;;  %1441 = vperm.xlu1 %1920, %v2396_v14   ;;  %v429_v14 = vmul.f32 1.7320508, %v393_v61  ;;  %v406_v30 = vmul.f32 %v2411_v43, %v399_v62  ;;  %v407_v31 = vmul.f32 %v2420_v48, %v399_v62 }
  0xb6   : > { %1472 = vperm.xlu0 %1919, %v2038_v59   ;;  %v420_v28 = vmul.f32 %v2424_v51, %v413_v3  ;;  %v421_v29 = vmul.f32 %v2431_v55, %v413_v3  ;;  %v459_v59 = vand.u32 2147483647, %v455_v34  ;;  %v972_v3 = vmul.f32 1.442695, %v935_v13 }
  0xb7   : > { %v433_v38 = vadd.f32 1.0, %v429_v14  ;;  %v497_v13 = vmul.f32 1.7320508, %v461_v40 }
  0xb8   : > { %v404_v22 = vpop.permute.xlu1 %403  ;;  %v424_v53 = vmin.f32 %v406_v30, %v420_v28  ;;  %v425_v56 = vmin.f32 %v407_v31, %v421_v29  ;;  %v495_v28 = vmul.f32 1.7320508, %v459_v59  ;;  %2065 = vpow2.f32 %v972_v3 }
  0xb9   : > { %1451 = vperm.xlu1 %1920, %v913_v36   ;;  %v465_v32 = vpop.permute.xlu0 %464  ;;  %v2052_v36 = vpop.eup %2051  ;;  %v408_v44 = vmul.f32 %v2440_v0, %v404_v22  ;;  %v409_v45 = vmul.f32 %v2444_v5, %v404_v22  ;;  %2067 = vpow2.f32 %v2458_v26 }
  0xba   : > { %1500 = vperm.xlu0 %1919, %v2046_v16   ;;  %v2054_v41 = vpop.eup %2053  ;;  %v496_v16 = vmul.f32 1.7320508, %v460_v39  ;;  %v436_v20 = vmul.f32 %v432_v37, %v424_v53  ;;  %v437_v21 = vmul.f32 %v433_v38, %v425_v56  ;;  %v472_v10 = vmul.f32 %v2411_v43, %v465_v32 }
  0xbb   : > { %v2056_v62 = vpop.eup %2055  ;;  %v473_v29 = vmul.f32 %v2420_v48, %v465_v32  ;;  %v937_v37 = vmul.f32 -1.7320508, %v2480_v8  ;;  %2069 = vpow2.f32 %v1032_v4 }
  0xbc   : > { %v418_v42 = vpop.permute.xlu1 %417  ;;  %v2058_v6 = vpop.eup %2057  ;;  %v500_v32 = vadd.f32 1.0, %v496_v16  ;;  %2071 = vpow2.f32 %v2473_v2 }
  0xbd   : > { %v422_v46 = vmul.f32 %v2447_v9, %v418_v42  ;;  %v423_v49 = vmul.f32 %v2456_v23, %v418_v42  ;;  %1477 = vperm.xlu1 %1920, %v2050_v27   ;;  %v479_v57 = vpop.permute.xlu0 %478  ;;  %v494_v27 = vmul.f32 1.7320508, %v458_v58  ;;  %v2060_v34 = vpop.eup %2059  ;;  %v997_v58 = vmul.f32 1.7320508, %v2480_v8 }
  0xbe   : > { %1482 = vperm.xlu0 %1919, %v2052_v36   ;;  %v486_v22 = vmul.f32 %v2424_v51, %v479_v57  ;;  %v487_v24 = vmul.f32 %v2431_v55, %v479_v57  ;;  %v976_v16 = vmul.f32 1.442695, %v937_v37 }
  0xbf   : > { %v426_v60 = vmin.f32 %v408_v44, %v422_v46  ;;  %v427_v61 = vmin.f32 %v409_v45, %v423_v49  ;;  %v501_v44 = vadd.f32 1.0, %v497_v13  ;;  %v498_v45 = vadd.f32 1.0, %v494_v27 }
  0xc0   : > { %v470_v1 = vpop.permute.xlu1 %469  ;;  %v490_v38 = vmin.f32 %v472_v10, %v486_v22  ;;  %v491_v39 = vmin.f32 %v473_v29, %v487_v24  ;;  %v499_v46 = vadd.f32 1.0, %v495_v28  ;;  %v1036_v27 = vmul.f32 1.442695, %v997_v58 }
  0xc1   : > { %v438_v19 = vmul.f32 %v434_v50, %v426_v60  ;;  %v439_v14 = vmul.f32 %v435_v52, %v427_v61  ;;  %1505 = vperm.xlu1 %1920, %v2054_v41   ;;  %v513_v25 = vpop.permute.xlu0 %512  ;;  %v474_v12 = vmul.f32 %v2440_v0, %v470_v1  ;;  %v475_v40 = vmul.f32 %v2444_v5, %v470_v1  ;;  %v2062_v1 = vpop.eup %2061 }
  0xc2   : > { %1510 = vperm.xlu0 %1919, %v2056_v62   ;;  %v520_v49 = vsub.f32 %v2341_v17, %v513_v25  ;;  %v521_v41 = vsub.f32 %v2337_v11, %v513_v25  ;;  %v502_v59 = vmul.f32 %v498_v45, %v490_v38  ;;  %v503_v60 = vmul.f32 %v499_v46, %v491_v39  ;;  %v2064_v22 = vpop.eup %2063 }
  0xc3   : > { %v441_v31 = vpack.c.bf16 %v439_v14, %v437_v21  ;;  %v440_v33 = vpack.c.bf16 %v438_v19, %v436_v20  ;;  %2073 = vpow2.f32 %v976_v16 }
  0xc4   : > { %v484_v30 = vpop.permute.xlu1 %483  ;;  %v524_v19 = vand.u32 2147483647, %v520_v49  ;;  %v525_v14 = vand.u32 2147483647, %v521_v41  ;;  %2075 = vpow2.f32 %v1036_v27 }
  0xc5   : > { %v488_v35 = vmul.f32 %v2447_v9, %v484_v30  ;;  %v489_v36 = vmul.f32 %v2456_v23, %v484_v30  ;;  %1487 = vperm.xlu1 %1920, %v2058_v6   ;;  %v531_v42 = vpop.permute.xlu0 %530  ;;  %743 = vmatprep.subr.bf16.mxu0 %v441_v31 }
  0xc6   : > { %1568 = vperm.xlu0 %1919, %v2418_v47   ;;  %744 = vmatpush1.bf16.msra.mxu0 %v440_v33  ;;  %v560_v10 = vmul.f32 1.7320508, %v524_v19  ;;  %v561_v29 = vmul.f32 1.7320508, %v525_v14  ;;  %v538_v30 = vmul.f32 %v2411_v43, %v531_v42 }
  0xc7   : > { %v492_v50 = vmin.f32 %v474_v12, %v488_v35  ;;  %v493_v52 = vmin.f32 %v475_v40, %v489_v36 }
  0xc8   : > { %v518_v53 = vpop.permute.xlu1 %517  ;;  %v565_v45 = vadd.f32 1.0, %v561_v29 }
  0xc9   : > { %v522_v56 = vsub.f32 %v2343_v18, %v518_v53  ;;  %v523_v57 = vsub.f32 %v2339_v15, %v518_v53  ;;  %1515 = vperm.xlu1 %1920, %v2060_v34   ;;  %v504_v47 = vmul.f32 %v500_v32, %v492_v50  ;;  %v505_v61 = vmul.f32 %v501_v44, %v493_v52  ;;  %v545_v62 = vpop.permute.xlu0 %544 }
  0xca   : > { %1578 = vperm.xlu0 %1919, %v2429_v54   ;;  %v552_v24 = vmul.f32 %v2424_v51, %v545_v62  ;;  %v553_v25 = vmul.f32 %v2431_v55, %v545_v62  ;;  %v2066_v54 = vpop.eup %2065  ;;  %v564_v44 = vadd.f32 1.0, %v560_v10 }
  0xcb   : > { %v526_v3 = vand.u32 2147483647, %v522_v56  ;;  %v527_v6 = vand.u32 2147483647, %v523_v57  ;;  %v507_v21 = vpack.c.bf16 %v505_v61, %v503_v60  ;;  %v506_v26 = vpack.c.bf16 %v504_v47, %v502_v59  ;;  %v2068_v39 = vpop.eup %2067 }
  0xcc   : > { %v536_v20 = vpop.permute.xlu1 %535  ;;  %v556_v36 = vmin.f32 %v538_v30, %v552_v24  ;;  %v2070_v50 = vpop.eup %2069 }
  0xcd   : > { %1573 = vperm.xlu1 %1920, %v2438_v63   ;;  %v579_v13 = vpop.permute.xlu0 %578  ;;  %745 = vmatprep.subr.bf16.mxu0 %v507_v21  ;;  %v562_v4 = vmul.f32 1.7320508, %v526_v3  ;;  %v563_v28 = vmul.f32 1.7320508, %v527_v6  ;;  %v539_v63 = vmul.f32 %v2420_v48, %v531_v42  ;;  %v540_v33 = vmul.f32 %v2440_v0, %v536_v20  ;;  %v2072_v61 = vpop.eup %2071 }
  0xce   : > { %1604 = vperm.xlu0 %1919, %v2062_v1   ;;  %746 = vmatpush1.bf16.msra.mxu0 %v506_v26  ;;  %v541_v2 = vmul.f32 %v2444_v5, %v536_v20  ;;  %v586_v46 = vsub.f32 %v2341_v17, %v579_v13  ;;  %v587_v49 = vsub.f32 %v2337_v11, %v579_v13  ;;  %v2074_v19 = vpop.eup %2073 }
  0xcf   : > { %v557_v37 = vmin.f32 %v539_v63, %v553_v25  ;;  %v566_v12 = vadd.f32 1.0, %v562_v4  ;;  %v567_v40 = vadd.f32 1.0, %v563_v28  ;;  %v568_v57 = vmul.f32 %v564_v44, %v556_v36  ;;  %v2076_v24 = vpop.eup %2075 }
  0xd0   : > { %v550_v31 = vpop.permute.xlu1 %549  ;;  %v590_v62 = vand.u32 2147483647, %v586_v46  ;;  %v591_v1 = vand.u32 2147483647, %v587_v49 }
  0xd1   : > { %v554_v34 = vmul.f32 %v2447_v9, %v550_v31  ;;  %v555_v35 = vmul.f32 %v2456_v23, %v550_v31  ;;  %1583 = vperm.xlu1 %1920, %v2480_v8   ;;  %v597_v38 = vpop.permute.xlu0 %596  ;;  %v569_v58 = vmul.f32 %v565_v45, %v557_v37 }
  0xd2   : > { %1632 = vperm.xlu0 %1919, %v2064_v22   ;;  %v626_v25 = vmul.f32 1.7320508, %v590_v62  ;;  %v627_v13 = vmul.f32 1.7320508, %v591_v1  ;;  %v604_v27 = vmul.f32 %v2411_v43, %v597_v38 }
  0xd3   : > { %v558_v32 = vmin.f32 %v540_v33, %v554_v34  ;;  %v559_v42 = vmin.f32 %v541_v2, %v555_v35 }
  0xd4   : > { %v584_v41 = vpop.permute.xlu1 %583 }
  0xd5   : > { %v570_v52 = vmul.f32 %v566_v12, %v558_v32  ;;  %v571_v8 = vmul.f32 %v567_v40, %v559_v42  ;;  %v588_v53 = vsub.f32 %v2343_v18, %v584_v41  ;;  %v589_v56 = vsub.f32 %v2339_v15, %v584_v41  ;;  %1609 = vperm.xlu1 %1920, %v2066_v54   ;;  %v611_v59 = vpop.permute.xlu0 %610 }
  0xd6   : > { %1614 = vperm.xlu0 %1919, %v2068_v39   ;;  %v618_v14 = vmul.f32 %v2424_v51, %v611_v59  ;;  %v619_v20 = vmul.f32 %v2431_v55, %v611_v59  ;;  %v605_v54 = vmul.f32 %v2420_v48, %v597_v38  ;;  %v630_v39 = vadd.f32 1.0, %v626_v25 }
  0xd7   : > { %v592_v60 = vand.u32 2147483647, %v588_v53  ;;  %v593_v47 = vand.u32 2147483647, %v589_v56  ;;  %v573_v6 = vpack.c.bf16 %v571_v8, %v569_v58  ;;  %v572_v16 = vpack.c.bf16 %v570_v52, %v568_v57 }
  0xd8   : > { %v602_v3 = vpop.permute.xlu1 %601  ;;  %v622_v63 = vmin.f32 %v604_v27, %v618_v14  ;;  %v623_v31 = vmin.f32 %v605_v54, %v619_v20  ;;  %v631_v12 = vadd.f32 1.0, %v627_v13 }
  0xd9   : > { %1637 = vperm.xlu1 %1920, %v2070_v50   ;;  %v645_v21 = vpop.permute.xlu0 %644  ;;  %747 = vmatprep.subr.bf16.mxu0 %v573_v6  ;;  %v628_v26 = vmul.f32 1.7320508, %v592_v60  ;;  %v629_v22 = vmul.f32 1.7320508, %v593_v47  ;;  %v606_v28 = vmul.f32 %v2440_v0, %v602_v3  ;;  %v607_v10 = vmul.f32 %v2444_v5, %v602_v3 }
  0xda   : > { %1642 = vperm.xlu0 %1919, %v2072_v61   ;;  %748 = vmatpush1.bf16.msra.mxu0 %v572_v16  ;;  %v652_v33 = vsub.f32 %v2341_v17, %v645_v21  ;;  %v653_v2 = vsub.f32 %v2337_v11, %v645_v21  ;;  %v634_v46 = vmul.f32 %v630_v39, %v622_v63 }
  0xdb   : > { %v632_v35 = vadd.f32 1.0, %v628_v26  ;;  %v633_v36 = vadd.f32 1.0, %v629_v22  ;;  %v635_v49 = vmul.f32 %v631_v12, %v623_v31 }
  0xdc   : > { %v616_v4 = vpop.permute.xlu1 %615  ;;  %v656_v17 = vand.u32 2147483647, %v652_v33  ;;  %v657_v41 = vand.u32 2147483647, %v653_v2 }
  0xdd   : > { %v620_v29 = vmul.f32 %v2447_v9, %v616_v4  ;;  %v621_v30 = vmul.f32 %v2456_v23, %v616_v4  ;;  %1619 = vperm.xlu1 %1920, %v2074_v19   ;;  %v663_v34 = vpop.permute.xlu0 %662 }
  0xde   : > { %v692_v59 = vmul.f32 1.7320508, %v656_v17  ;;  %v693_v60 = vmul.f32 1.7320508, %v657_v41 }
  0xdf   : > { %v624_v37 = vmin.f32 %v606_v28, %v620_v29  ;;  %v625_v38 = vmin.f32 %v607_v10, %v621_v30 }
  0xe0   : > { %v650_v40 = vpop.permute.xlu1 %649  ;;  %v696_v19 = vadd.f32 1.0, %v692_v59  ;;  %v697_v14 = vadd.f32 1.0, %v693_v60 }
  0xe1   : > { %v636_v32 = vmul.f32 %v632_v35, %v624_v37  ;;  %v637_v42 = vmul.f32 %v633_v36, %v625_v38  ;;  %v654_v44 = vsub.f32 %v2343_v18, %v650_v40  ;;  %v655_v45 = vsub.f32 %v2339_v15, %v650_v40  ;;  %1647 = vperm.xlu1 %1920, %v2076_v24   ;;  %v677_v11 = vpop.permute.xlu0 %676 }
  0xe2   : > { %v684_v8 = vmul.f32 %v2424_v51, %v677_v11  ;;  %v685_v53 = vmul.f32 %v2431_v55, %v677_v11  ;;  %v670_v18 = vmul.f32 %v2411_v43, %v663_v34  ;;  %v671_v15 = vmul.f32 %v2420_v48, %v663_v34 }
  0xe3   : > { %v658_v50 = vand.u32 2147483647, %v654_v44  ;;  %v659_v52 = vand.u32 2147483647, %v655_v45  ;;  %v639_v57 = vpack.c.bf16 %v637_v42, %v635_v49  ;;  %v638_v58 = vpack.c.bf16 %v636_v32, %v634_v46  ;;  %v1698_v42 = vld [vmem:[%s3091_s4] sm:$0xff] }
  0xe4   : > { %v668_v56 = vpop.permute.xlu1 %667  ;;  %v688_v62 = vmin.f32 %v670_v18, %v684_v8  ;;  %v689_v1 = vmin.f32 %v671_v15, %v685_v53  ;;  %v1870_v44 = vcombine.high %v1698_v42, %v1698_v42 }
  0xe5   : > { %749 = vmatprep.subr.bf16.mxu0 %v639_v57  ;;  %v694_v47 = vmul.f32 1.7320508, %v658_v50  ;;  %v695_v61 = vmul.f32 1.7320508, %v659_v52  ;;  %v672_v51 = vmul.f32 %v2440_v0, %v668_v56  ;;  %v673_v55 = vmul.f32 %v2444_v5, %v668_v56  ;;  %v1921_v0 = vld [vmem:[%s3089_s2] sm:$0xff]   ;;  %v1922_v5 = vld [vmem:[%s3089_s2 + $0x8] sm:$0xff]  }
  0xe6   : > { %750 = vmatpush1.bf16.msra.mxu0 %v638_v58  ;;  %v700_v26 = vmul.f32 %v696_v19, %v688_v62  ;;  %v701_v22 = vmul.f32 %v697_v14, %v689_v1  ;;  %1871 = vmatprep.mubr.msk.bf16.mxu1 %vm1729_vm1, %v1870_v44 }
  0xe7   : > { %v698_v43 = vadd.f32 1.0, %v694_v47  ;;  %v699_v20 = vadd.f32 1.0, %v695_v61 }
  0xe8   : > { %v682_v3 = vpop.permute.xlu1 %681 }
  0xe9   : > { %v686_v6 = vmul.f32 %v2447_v9, %v682_v3  ;;  %v687_v16 = vmul.f32 %v2456_v23, %v682_v3  ;;  %v2540_v9 = vpop.permute.xlu0 %1040 }
  0xeb   : > { %v690_v48 = vmin.f32 %v672_v51, %v686_v6  ;;  %v691_v21 = vmin.f32 %v673_v55, %v687_v16 }
  0xec   : > { %v2542_v23 = vpop.permute.xlu1 %1045 }
  0xed   : > { %v702_v24 = vmul.f32 %v698_v43, %v690_v48  ;;  %v703_v25 = vmul.f32 %v699_v20, %v691_v21  ;;  %v2544_v54 = vpop.permute.xlu0 %1050 }
  0xef   : > { %v705_v13 = vpack.c.bf16 %v703_v25, %v701_v22  ;;  %v704_v27 = vpack.c.bf16 %v702_v24, %v700_v26 }
  0xf0   : > { %v2546_v4 = vpop.permute.xlu1 %1055 }
  0xf1   : > { %751 = vmatprep.subr.bf16.mxu0 %v705_v13  ;;  %v2548_v28 = vpop.permute.xlu0 %1076 }
  0xf2   : > { %752 = vmatpush1.bf16.msra.mxu0 %v704_v27 }
  0xf4   : > { %v2550_v10 = vpop.permute.xlu1 %1081 }
  0xf5   : > { %1867 = vmatmul.mubr.msk.bf16.vlgmr.msra.gmra.mrb[0].mxu0 %vm734_vm0, %v1921_v0  ;;  %v2552_v29 = vpop.permute.xlu0 %1104 }
  0xf6   : > { %783 = vmatprep.mubr.bf16.mxu0 %v2206_v7 }
  0xf8   : > { %v2554_v7 = vpop.permute.xlu1 %1109 }
  0xf9   : > { %v2556_v30 = vpop.permute.xlu0 %1086 }
  0xfc   : > { %v2558_v63 = vpop.permute.xlu1 %1091 }
  0xfd   : > { %1868 = vmatmul.mubr.msk.bf16.gmra.mrb[4].mxu0 %vm734_vm0, %v1922_v5  ;;  %v2560_v31 = vpop.permute.xlu0 %1114 }
 0x100   : > { %v2562_v33 = vpop.permute.xlu1 %1119 }
 0x101   : > { %v2564_v2 = vpop.permute.xlu0 %1172 }
 0x104   : > { %v2566_v34 = vpop.permute.xlu1 %1177 }
 0x105   : > { %v2568_v35 = vpop.permute.xlu0 %1182 }
 0x108   : > { %v2570_v36 = vpop.permute.xlu1 %1187 }
 0x109   : > { %v2572_v37 = vpop.permute.xlu0 %1208 }
 0x10c   : > { %v2574_v38 = vpop.permute.xlu1 %1213 }
 0x10d   : > { %v2576_v39 = vpop.permute.xlu0 %1236 }
 0x110   : > { %v2578_v12 = vpop.permute.xlu1 %1241 }
 0x111   : > { %v2580_v40 = vpop.permute.xlu0 %1218 }
 0x114   : > { %v2582_v32 = vpop.permute.xlu1 %1223 }
 0x115   : > { %v2587_v45 = vpop.permute.xlu0 %1246 }
 0x118   : > { %v2589_v46 = vpop.permute.xlu1 %1251 }
 0x119   : > { %v2591_v49 = vpop.permute.xlu0 %1304 }
 0x11a   : > { %3116 = vst [vmem:[#allocation7_spill] sm:$0xff] %v2591_v49 }
 0x11c   : > { %v2593_v17 = vpop.permute.xlu1 %1309 }
 0x11d   : > { %3117 = vst [vmem:[#allocation8_spill] sm:$0xff] %v2593_v17  ;;  %v2622_v14 = vpop.permute.xlu0 %1314 }
 0x11e   : > { %3118 = vst [vmem:[#allocation9_spill] sm:$0xff] %v2622_v14 }
 0x120   : > { %v2624_v43 = vpop.permute.xlu1 %1319 }
 0x121   : > { %3119 = vst [vmem:[#allocation10_spill] sm:$0xff] %v2624_v43 }
 0x1c8   : > { %v2595_v41 = vpop.f32.mrb[0].mxu0 }
 0x1c9   : > { %v850_v11 = vmul.f32 1.7320508, %v2595_v41  ;;  %v874_v50 = vmul.f32 -1.7320508, %v2595_v41  ;;  %v2599_v52 = vpop.f32.mrb[1].mxu0  ;;  %v794_v8 = vsub.f32 0.0, %v2595_v41 }
 0x1ca   : > { %v851_v56 = vmul.f32 1.7320508, %v2599_v52  ;;  %v875_v57 = vmul.f32 -1.7320508, %v2599_v52  ;;  %v2606_v58 = vpop.f32.mrb[2].mxu0  ;;  %v795_v59 = vsub.f32 0.0, %v2599_v52  ;;  %v1059_v60 = vsub.f32 %v2599_v52, %v2540_v9 }
 0x1cb   : > { %v858_v18 = vmul.f32 1.442695, %v850_v11  ;;  %v882_v15 = vmul.f32 1.442695, %v874_v50  ;;  %v852_v47 = vmul.f32 1.7320508, %v2606_v58 }
 0x1cc   : > { %v860_v62 = vmul.f32 1.442695, %v851_v56  ;;  %v884_v1 = vmul.f32 1.442695, %v875_v57  ;;  %v876_v3 = vmul.f32 -1.7320508, %v2606_v58 }
 0x1cd   : > { %2077 = vpow2.f32 %v858_v18  ;;  %v862_v55 = vmul.f32 1.442695, %v852_v47  ;;  %v2617_v6 = vpop.f32.mrb[3].mxu0  ;;  %v2619_v16 = vmul.f32 1.442695, %v795_v59  ;;  %v796_v19 = vsub.f32 0.0, %v2606_v58  ;;  %v2648_v47 = vpop.permute.xlu0 %1340 }
 0x1ce   : > { %2079 = vpow2.f32 %v882_v15  ;;  %v886_v20 = vmul.f32 1.442695, %v876_v3  ;;  %v853_v48 = vmul.f32 1.7320508, %v2617_v6  ;;  %v877_v21 = vmul.f32 -1.7320508, %v2617_v6 }
 0x1cf   : > { %2081 = vpow2.f32 %v860_v62  ;;  %v797_v26 = vsub.f32 0.0, %v2617_v6  ;;  %v2629_v22 = vmul.f32 1.442695, %v794_v8  ;;  %v2631_v24 = vmul.f32 1.442695, %v796_v19  ;;  %3120 = vst [vmem:[#allocation11_spill] sm:$0xff] %v2648_v47  ;;  %v2650_v62 = vpop.permute.xlu1 %1345 }
 0x1d0   : > { %2083 = vpow2.f32 %v884_v1  ;;  %v864_v25 = vmul.f32 1.442695, %v853_v48  ;;  %v888_v13 = vmul.f32 1.442695, %v877_v21  ;;  %v2633_v27 = vpop.f32.mrb[4].mxu0  ;;  %v1061_v0 = vsub.f32 %v2617_v6, %v2542_v23  ;;  %3121 = vst [vmem:[#allocation12_spill] sm:$0xff] %v2650_v62 }
 0x1d1   : > { %2085 = vpow2.f32 %v862_v55  ;;  %v854_v5 = vmul.f32 1.7320508, %v2633_v27  ;;  %v878_v42 = vmul.f32 -1.7320508, %v2633_v27  ;;  %v2639_v44 = vpop.f32.mrb[5].mxu0  ;;  %v798_v11 = vsub.f32 0.0, %v2633_v27  ;;  %v2670_v14 = vpop.permute.xlu0 %1368 }
 0x1d2   : > { %2087 = vpow2.f32 %v886_v20  ;;  %v855_v50 = vmul.f32 1.7320508, %v2639_v44  ;;  %v879_v8 = vmul.f32 -1.7320508, %v2639_v44  ;;  %v2644_v56 = vpop.f32.mrb[6].mxu0  ;;  %v799_v57 = vsub.f32 0.0, %v2639_v44 }
 0x1d3   : > { %2089 = vpow2.f32 %v864_v25  ;;  %v866_v59 = vmul.f32 1.442695, %v854_v5  ;;  %v890_v18 = vmul.f32 1.442695, %v878_v42  ;;  %v856_v15 = vmul.f32 1.7320508, %v2644_v56 }
 0x1d4   : > { %2091 = vpow2.f32 %v888_v13  ;;  %v868_v1 = vmul.f32 1.442695, %v855_v50  ;;  %v892_v3 = vmul.f32 1.442695, %v879_v8  ;;  %v880_v55 = vmul.f32 -1.7320508, %v2644_v56 }
 0x1d5   : > { %2093 = vpow2.f32 %v866_v59  ;;  %v870_v19 = vmul.f32 1.442695, %v856_v15  ;;  %v2653_v20 = vpop.f32.mrb[7].mxu0  ;;  %v808_v48 = vmul.f32 1.442695, %v797_v26  ;;  %v800_v21 = vsub.f32 0.0, %v2644_v56 }
 0x1d6   : > { %2095 = vpow2.f32 %v890_v18  ;;  %v894_v25 = vmul.f32 1.442695, %v880_v55  ;;  %v801_v5 = vsub.f32 0.0, %v2653_v20  ;;  %v857_v42 = vmul.f32 1.7320508, %v2653_v20  ;;  %3122 = vst [vmem:[#allocation13_spill] sm:$0xff] %v2670_v14 }
 0x1d7   : > { %v2658_v51 = vpop.eup %2077  ;;  %2097 = vpow2.f32 %v868_v1  ;;  %v881_v13 = vmul.f32 -1.7320508, %v2653_v20  ;;  %v812_v50 = vmul.f32 1.442695, %v799_v57  ;;  %v810_v8 = vmul.f32 1.442695, %v798_v11  ;;  %v2672_v11 = vpop.permute.xlu1 %1373 }
 0x1d8   : > { %v2661_v59 = vpop.eup %2079  ;;  %2099 = vpow2.f32 %v892_v3  ;;  %v816_v15 = vmul.f32 1.442695, %v801_v5  ;;  %v872_v26 = vmul.f32 1.442695, %v857_v42  ;;  %v814_v61 = vmul.f32 1.442695, %v800_v21 }
 0x1d9   : > { %v2663_v53 = vpop.eup %2081  ;;  %2101 = vpow2.f32 %v870_v19  ;;  %v896_v18 = vmul.f32 1.442695, %v881_v13  ;;  %v1067_v55 = vand.u32 2147483647, %v1059_v60  ;;  %v1069_v43 = vand.u32 2147483647, %v1061_v0 }
 0x1da   : > { %v2668_v1 = vpop.eup %2083  ;;  %3123 = vst [vmem:[#allocation14_spill] sm:$0xff] %v2672_v11  ;;  %2103 = vpow2.f32 %v894_v25  ;;  %v1095_v57 = vmul.f32 %v2663_v53, %v2548_v28  ;;  %v3124_v3 = vsub.f32 %v2595_v41, %v2540_v9  ;;  %v3125_v21 = vsub.f32 %v2606_v58, %v2542_v23 }
 0x1db   : > { %v2682_v60 = vpop.eup %2085  ;;  %2105 = vpow2.f32 %v872_v26  ;;  %v1123_v0 = vmul.f32 %v2668_v1, %v2552_v29  ;;  %v1139_v42 = vmul.f32 1.7320508, %v1067_v55  ;;  %v1141_v13 = vmul.f32 1.7320508, %v1069_v43 }
 0x1dc   : > { %v1066_v19 = vand.u32 2147483647, %v3124_v3  ;;  %v1068_v5 = vand.u32 2147483647, %v3125_v21  ;;  %v2686_v25 = vpop.eup %2087  ;;  %2107 = vpow2.f32 %v896_v18  ;;  %v1094_v11 = vmul.f32 %v2658_v51, %v2548_v28 }
 0x1dd   : > { %v1096_v9 = vmul.f32 %v2682_v60, %v2550_v10  ;;  %v1122_v23 = vmul.f32 %v2661_v59, %v2552_v29  ;;  %v2694_v3 = vpop.eup %2089  ;;  %2109 = vpow2.f32 %v2619_v16  ;;  %v1131_v26 = vmin.f32 %v1095_v57, %v1123_v0 }
 0x1de   : > { %v1147_v21 = vadd.f32 1.0, %v1139_v42  ;;  %v1149_v55 = vadd.f32 1.0, %v1141_v13  ;;  %v2697_v43 = vpop.eup %2091  ;;  %2111 = vpow2.f32 %v808_v48  ;;  %v1097_v18 = vmul.f32 %v2694_v3, %v2550_v10  ;;  %v2712_v48 = vpop.permute.xlu0 %1350 }
 0x1df   : > { %v1124_v28 = vmul.f32 %v2686_v25, %v2554_v7  ;;  %v1130_v14 = vmin.f32 %v1094_v11, %v1122_v23  ;;  %v2703_v62 = vpop.eup %2093  ;;  %2113 = vpow2.f32 %v2629_v22  ;;  %v1125_v29 = vmul.f32 %v2697_v43, %v2554_v7  ;;  %3127 = vst [vmem:[#allocation16_spill] sm:$0xff] %v2712_v48  ;;  %v2714_v42 = vpop.permute.xlu1 %1355 }
 0x1e0   : > { %v2708_v16 = vmul.f32 %v1147_v21, %v1131_v26  ;;  %v1138_v57 = vmul.f32 1.7320508, %v1066_v19  ;;  %v2710_v0 = vpop.eup %2095  ;;  %3128 = vst [vmem:[#allocation17_spill] sm:$0xff] %v2714_v42  ;;  %2115 = vpow2.f32 %v2631_v24  ;;  %v1140_v11 = vmul.f32 1.7320508, %v1068_v5 }
 0x1e1   : > { %v1132_v10 = vmin.f32 %v1096_v9, %v1124_v28  ;;  %v1063_v13 = vsub.f32 %v2639_v44, %v2544_v54  ;;  %v2719_v22 = vpop.eup %2097  ;;  %2117 = vpow2.f32 %v812_v50  ;;  %v1133_v7 = vmin.f32 %v1097_v18, %v1125_v29 }
 0x1e2   : > { %3126 = vst [vmem:[#allocation15_spill] sm:$0xff] %v2708_v16  ;;  %v1146_v23 = vadd.f32 1.0, %v1138_v57  ;;  %v1065_v19 = vsub.f32 %v2653_v20, %v2546_v4  ;;  %v2723_v26 = vpop.eup %2099  ;;  %2119 = vpow2.f32 %v816_v15  ;;  %v1148_v21 = vadd.f32 1.0, %v1140_v11 }
 0x1e3   : > { %v1071_v42 = vand.u32 2147483647, %v1063_v13  ;;  %v1099_v24 = vmul.f32 %v2719_v22, %v2556_v30  ;;  %v2727_v5 = vpop.eup %2101  ;;  %2121 = vpow2.f32 %v810_v8  ;;  %v2729_v9 = vmul.f32 %v1149_v55, %v1133_v7 }
 0x1e4   : > { %v2731_v28 = vmul.f32 %v1146_v23, %v1130_v14  ;;  %v1073_v50 = vand.u32 2147483647, %v1065_v19  ;;  %v2733_v18 = vpop.eup %2103  ;;  %2123 = vpow2.f32 %v814_v61  ;;  %v2735_v29 = vmul.f32 %v1148_v21, %v1132_v10  ;;  %v2749_v61 = vpop.permute.xlu0 %1378 }
 0x1e5   : > { %v1127_v15 = vmul.f32 %v2723_v26, %v2560_v31  ;;  %v1143_v57 = vmul.f32 1.7320508, %v1071_v42  ;;  %v2739_v11 = vpop.eup %2105  ;;  %v1062_v14 = vsub.f32 %v2633_v27, %v2544_v54  ;;  %v1064_v55 = vsub.f32 %v2644_v56, %v2546_v4  ;;  %3131 = vst [vmem:[#allocation20_spill] sm:$0xff] %v2749_v61  ;;  %v2751_v10 = vpop.permute.xlu1 %1383 }
 0x1e6   : > { %3129 = vst [vmem:[#allocation18_spill] sm:$0xff] %v2731_v28  ;;  %3130 = vst [vmem:[#allocation19_spill] sm:$0xff] %v2735_v29  ;;  %v1145_v8 = vmul.f32 1.7320508, %v1073_v50  ;;  %v2747_v7 = vpop.eup %2107  ;;  %v1101_v23 = vmul.f32 %v2739_v11, %v2558_v63  ;;  %v1100_v42 = vmul.f32 %v2727_v5, %v2558_v63 }
 0x1e7   : > { %3132 = vst [vmem:[#allocation21_spill] sm:$0xff] %v2751_v10  ;;  %v1135_v19 = vmin.f32 %v1099_v24, %v1127_v15  ;;  %v1151_v21 = vadd.f32 1.0, %v1143_v57  ;;  %v2110_v50 = vpop.eup %2109  ;;  %v1129_v54 = vmul.f32 %v2747_v7, %v2562_v33  ;;  %v1070_v4 = vand.u32 2147483647, %v1062_v14 }
 0x1e8   : > { %v1153_v13 = vadd.f32 1.0, %v1145_v8  ;;  %v1072_v48 = vand.u32 2147483647, %v1064_v55  ;;  %v2112_v47 = vpop.eup %2111  ;;  %v819_v17 = vadd.f32 1.0, %v2110_v50  ;;  %v1098_v10 = vmul.f32 %v2703_v62, %v2556_v30 }
 0x1e9   : > { %v2759_v61 = vmul.f32 %v1151_v21, %v1135_v19  ;;  %v2114_v28 = vpop.eup %2113  ;;  %v821_v24 = vadd.f32 1.0, %v2112_v47  ;;  %v1137_v15 = vmin.f32 %v1101_v23, %v1129_v54  ;;  %v1126_v57 = vmul.f32 %v2710_v0, %v2560_v31  ;;  %v2771_v47 = vpop.permute.xlu0 %1436 }
 0x1ea   : > { %v1128_v8 = vmul.f32 %v2733_v18, %v2562_v33  ;;  %v2116_v14 = vpop.eup %2115  ;;  %2125 = vrcp.f32 %v819_v17  ;;  %v818_v55 = vadd.f32 1.0, %v2114_v28  ;;  %v1142_v19 = vmul.f32 1.7320508, %v1070_v4  ;;  %v2773_v23 = vpop.permute.xlu1 %1441 }
 0x1eb   : > { %v1144_v21 = vmul.f32 1.7320508, %v1072_v48  ;;  %v2118_v50 = vpop.eup %2117  ;;  %2127 = vrcp.f32 %v821_v24  ;;  %v820_v30 = vadd.f32 1.0, %v2116_v14  ;;  %v2769_v29 = vmul.f32 %v1153_v13, %v1137_v15  ;;  %3133 = vst [vmem:[#allocation22_spill] sm:$0xff] %v2773_v23 }
 0x1ec   : > { %v1134_v63 = vmin.f32 %v1098_v10, %v1126_v57  ;;  %v2120_v49 = vpop.eup %2119  ;;  %2129 = vrcp.f32 %v818_v55  ;;  %v823_v31 = vadd.f32 1.0, %v2118_v50  ;;  %v1136_v54 = vmin.f32 %v1100_v42, %v1128_v8 }
 0x1ed   : > { %v1150_v33 = vadd.f32 1.0, %v1142_v19  ;;  %v2122_v16 = vpop.eup %2121  ;;  %2131 = vrcp.f32 %v820_v30  ;;  %v825_v17 = vadd.f32 1.0, %v2120_v49  ;;  %v1152_v28 = vadd.f32 1.0, %v1144_v21  ;;  %v2796_v50 = vpop.permute.xlu0 %1446 }
 0x1ee   : > { %v2124_v4 = vpop.eup %2123  ;;  %2133 = vrcp.f32 %v823_v31  ;;  %v822_v13 = vadd.f32 1.0, %v2122_v16  ;;  %v1193_v24 = vsub.f32 %v2617_v6, %v2566_v34  ;;  %v3134_v42 = vsub.f32 %v2599_v52, %v2564_v2  ;;  %3135 = vst [vmem:[#allocation23_spill] sm:$0xff] %v2796_v50  ;;  %v2798_v30 = vpop.permute.xlu1 %1451 }
 0x1ef   : > { %v2777_v10 = vmul.f32 %v1150_v33, %v1134_v63  ;;  %2135 = vrcp.f32 %v825_v17  ;;  %v824_v15 = vadd.f32 1.0, %v2124_v4  ;;  %v2781_v57 = vmul.f32 %v1152_v28, %v1136_v54  ;;  %3136 = vst [vmem:[#allocation24_spill] sm:$0xff] %v2798_v30 }
 0x1f0   : > { %v1199_v49 = vand.u32 2147483647, %v3134_v42  ;;  %2137 = vrcp.f32 %v822_v13  ;;  %v1201_v8 = vand.u32 2147483647, %v1193_v24  ;;  %v1227_v14 = vmul.f32 %v2663_v53, %v2572_v37 }
 0x1f1   : > { %v1229_v16 = vmul.f32 %v2694_v3, %v2574_v38  ;;  %2139 = vrcp.f32 %v824_v15  ;;  %v1255_v19 = vmul.f32 %v2668_v1, %v2576_v39  ;;  %v1257_v21 = vmul.f32 %v2697_v43, %v2578_v12  ;;  %v2821_v30 = vpop.permute.xlu0 %1472 }
 0x1f2   : > { %v1271_v63 = vmul.f32 1.7320508, %v1199_v49  ;;  %v1273_v31 = vmul.f32 1.7320508, %v1201_v8  ;;  %v1190_v54 = vsub.f32 %v2595_v41, %v2564_v2  ;;  %v1192_v33 = vsub.f32 %v2606_v58, %v2566_v34 }
 0x1f3   : > { %v1263_v17 = vmin.f32 %v1227_v14, %v1255_v19  ;;  %v1265_v28 = vmin.f32 %v1229_v16, %v1257_v21  ;;  %v1226_v4 = vmul.f32 %v2658_v51, %v2572_v37  ;;  %v1228_v13 = vmul.f32 %v2682_v60, %v2574_v38 }
 0x1f4   : > { %v2126_v24 = vpop.eup %2125  ;;  %v1279_v15 = vadd.f32 1.0, %v1271_v63  ;;  %v1281_v42 = vadd.f32 1.0, %v1273_v31  ;;  %v1198_v55 = vand.u32 2147483647, %v1190_v54  ;;  %v1200_v49 = vand.u32 2147483647, %v1192_v33 }
 0x1f5   : > { %v2128_v8 = vpop.eup %2127  ;;  %v835_v48 = vmul.f32 %v2126_v24, %v2599_v52  ;;  %v1254_v2 = vmul.f32 %v2661_v59, %v2576_v39  ;;  %v1256_v34 = vmul.f32 %v2686_v25, %v2578_v12  ;;  %v1195_v37 = vsub.f32 %v2639_v44, %v2568_v35  ;;  %v2823_v12 = vpop.permute.xlu1 %1477 }
 0x1f6   : > { %v2130_v14 = vpop.eup %2129  ;;  %v837_v38 = vmul.f32 %v2128_v8, %v2617_v6  ;;  %v2816_v16 = vmul.f32 %v1279_v15, %v1263_v17  ;;  %v2818_v19 = vmul.f32 %v1281_v42, %v1265_v28  ;;  %v1270_v21 = vmul.f32 1.7320508, %v1198_v55 }
 0x1f7   : > { %v2132_v63 = vpop.eup %2131  ;;  %v834_v31 = vmul.f32 %v2130_v14, %v2595_v41  ;;  %v1262_v54 = vmin.f32 %v1226_v4, %v1254_v2  ;;  %v1264_v33 = vmin.f32 %v1228_v13, %v1256_v34  ;;  %v1272_v39 = vmul.f32 1.7320508, %v1200_v49 }
 0x1f8   : > { %v2134_v24 = vpop.eup %2133  ;;  %v843_v50 = vpack.c.bf16 %v837_v38, %v835_v48  ;;  %v836_v23 = vmul.f32 %v2132_v63, %v2606_v58  ;;  %v1278_v28 = vadd.f32 1.0, %v1270_v21  ;;  %v1197_v4 = vsub.f32 %v2653_v20, %v2570_v36 }
 0x1f9   : > { %v2136_v15 = vpop.eup %2135  ;;  %v839_v55 = vmul.f32 %v2134_v24, %v2639_v44  ;;  %v1280_v42 = vadd.f32 1.0, %v1272_v39  ;;  %v1203_v13 = vand.u32 2147483647, %v1195_v37  ;;  %v1231_v34 = vmul.f32 %v2719_v22, %v2580_v40 }
 0x1fa   : > { %v2138_v49 = vpop.eup %2137  ;;  %1733 = vmatprep.subr.bf16.mxu1 %v843_v50  ;;  %v842_v8 = vpack.c.bf16 %v836_v23, %v834_v31  ;;  %v841_v2 = vmul.f32 %v2136_v15, %v2653_v20  ;;  %v2832_v48 = vmul.f32 %v1278_v28, %v1262_v54  ;;  %v1205_v63 = vand.u32 2147483647, %v1197_v4  ;;  %v2850_v15 = vpop.permute.xlu0 %1500 }
 0x1fb   : > { %v2140_v14 = vpop.eup %2139  ;;  %v838_v38 = vmul.f32 %v2138_v49, %v2633_v27  ;;  %v2837_v21 = vmul.f32 %v1280_v42, %v1264_v33  ;;  %v1233_v39 = vmul.f32 %v2739_v11, %v2582_v32  ;;  %v1259_v50 = vmul.f32 %v2723_v26, %v2587_v45  ;;  %v2852_v42 = vpop.permute.xlu1 %1505 }
 0x1fc   : > { %1734 = vmatpush1.bf16.msra.mxu1 %v842_v8  ;;  %v845_v37 = vpack.c.bf16 %v841_v2, %v839_v55  ;;  %v840_v23 = vmul.f32 %v2140_v14, %v2644_v56  ;;  %v1261_v31 = vmul.f32 %v2747_v7, %v2589_v46  ;;  %v1275_v24 = vmul.f32 1.7320508, %v1203_v13  ;;  %3137 = vst [vmem:[#allocation25_spill] sm:$0xff] %v2852_v42 }
 0x1fd   : > { %v1277_v33 = vmul.f32 1.7320508, %v1205_v63  ;;  %v1194_v28 = vsub.f32 %v2633_v27, %v2568_v35  ;;  %v1267_v4 = vmin.f32 %v1231_v34, %v1259_v50  ;;  %v1196_v8 = vsub.f32 %v2644_v56, %v2570_v36 }
 0x1fe   : > { %1735 = vmatprep.subr.bf16.mxu1 %v845_v37  ;;  %v844_v55 = vpack.c.bf16 %v840_v23, %v838_v38  ;;  %v1269_v49 = vmin.f32 %v1233_v39, %v1261_v31  ;;  %v1283_v2 = vadd.f32 1.0, %v1275_v24  ;;  %v1230_v13 = vmul.f32 %v2703_v62, %v2580_v40  ;;  %v3138_v38 = vld [vmem:[#allocation15_spill] sm:$0xff] }
 0x1ff   : > { %v1285_v14 = vadd.f32 1.0, %v1277_v33  ;;  %v1202_v17 = vand.u32 2147483647, %v1194_v28  ;;  %v1204_v63 = vand.u32 2147483647, %v1196_v8  ;;  %v1232_v35 = vmul.f32 %v2727_v5, %v2582_v32  ;;  %v3140_v31 = vld [vmem:[#allocation7_spill] sm:$0xff] }
 0x200   : > { %1736 = vmatpush1.bf16.msra.mxu1 %v844_v55  ;;  %v1258_v37 = vmul.f32 %v2710_v0, %v2587_v45  ;;  %v1260_v34 = vmul.f32 %v2733_v18, %v2589_v46  ;;  %v3139_v36 = vpack.c.bf16 %v2729_v9, %v3138_v38  ;;  %v1291_v39 = vmul.f32 %v1283_v2, %v1267_v4  ;;  %v3141_v32 = vld [vmem:[#allocation8_spill] sm:$0xff]  ;;  %v3142_v46 = vld [vmem:[#allocation11_spill] sm:$0xff]  ;;  %v2873_v9 = vpop.permute.xlu0 %1482  ;;  %v2875_v4 = vpop.permute.xlu1 %1487 }
 0x201   : > { %v1293_v23 = vmul.f32 %v1285_v14, %v1269_v49  ;;  %v1274_v50 = vmul.f32 1.7320508, %v1202_v17  ;;  %v1323_v40 = vsub.f32 %v2599_v52, %v3140_v31  ;;  %v1276_v28 = vmul.f32 1.7320508, %v1204_v63  ;;  %3143 = vst [vmem:[#allocation15_spill] sm:$0xff] %v2873_v9  ;;  %3144 = vst [vmem:[#allocation7_spill] sm:$0xff] %v2875_v4 }
 0x202   : > { %1737 = vmatprep.subr.bf16.mxu1 %v3139_v36  ;;  %v1266_v24 = vmin.f32 %v1230_v13, %v1258_v37  ;;  %v1268_v33 = vmin.f32 %v1232_v35, %v1260_v34  ;;  %v1325_v55 = vsub.f32 %v2617_v6, %v3141_v32  ;;  %v1359_v42 = vmul.f32 %v2663_v53, %v3142_v46  ;;  %v3145_v17 = vld [vmem:[#allocation19_spill] sm:$0xff]  ;;  %v3146_v49 = vld [vmem:[#allocation18_spill] sm:$0xff]  ;;  %v3148_v63 = vld [vmem:[#allocation12_spill] sm:$0xff] }
 0x203   : > { %v1297_v45 = vpack.c.bf16 %v1293_v23, %v1291_v39  ;;  %v1282_v8 = vadd.f32 1.0, %v1274_v50  ;;  %v1331_v54 = vand.u32 2147483647, %v1323_v40  ;;  %v3147_v2 = vpack.c.bf16 %v3145_v17, %v3146_v49  ;;  %v3149_v37 = vld [vmem:[#allocation13_spill] sm:$0xff]  ;;  %v3151_v39 = vld [vmem:[#allocation14_spill] sm:$0xff] }
 0x204   : > { %v1284_v14 = vadd.f32 1.0, %v1276_v28  ;;  %v1333_v13 = vand.u32 2147483647, %v1325_v55  ;;  %v1361_v35 = vmul.f32 %v2694_v3, %v3148_v63  ;;  %v1387_v34 = vmul.f32 %v2668_v1, %v3149_v37 }
 0x205   : > { %1738 = vmatpush1.bf16.msra.mxu1 %v3147_v2  ;;  %v3150_v38 = vpack.c.bf16 %v2769_v29, %v2759_v61  ;;  %v1290_v36 = vmul.f32 %v1282_v8, %v1266_v24  ;;  %v1389_v23 = vmul.f32 %v2697_v43, %v3151_v39  ;;  %v1403_v50 = vmul.f32 1.7320508, %v1331_v54 }
 0x206   : > { %v1322_v40 = vsub.f32 %v2595_v41, %v3140_v31  ;;  %v1292_v28 = vmul.f32 %v1284_v14, %v1268_v33  ;;  %v1395_v55 = vmin.f32 %v1359_v42, %v1387_v34  ;;  %v1405_v17 = vmul.f32 1.7320508, %v1333_v13  ;;  %v3154_v34 = vld [vmem:[#allocation9_spill] sm:$0xff] }
 0x207   : > { %1739 = vmatprep.subr.bf16.mxu1 %v3150_v38  ;;  %v1324_v49 = vsub.f32 %v2606_v58, %v3141_v32  ;;  %v1397_v2 = vmin.f32 %v1361_v35, %v1389_v23  ;;  %v1411_v4 = vadd.f32 1.0, %v1403_v50  ;;  %v1358_v29 = vmul.f32 %v2658_v51, %v3142_v46  ;;  %v3155_v38 = vld [vmem:[#allocation10_spill] sm:$0xff] }
 0x208   : > { %v1330_v9 = vand.u32 2147483647, %v1322_v40  ;;  %v3152_v61 = vpack.c.bf16 %v2781_v57, %v2777_v10  ;;  %v1296_v54 = vpack.c.bf16 %v1292_v28, %v1290_v36  ;;  %v1413_v24 = vadd.f32 1.0, %v1405_v17  ;;  %v2907_v10 = vpop.permute.xlu0 %1510  ;;  %v2909_v57 = vpop.permute.xlu1 %1515  ;;  %v3158_v17 = vld [vmem:[#allocation17_spill] sm:$0xff] }
 0x209   : > { %v1332_v8 = vand.u32 2147483647, %v1324_v49  ;;  %v1360_v42 = vmul.f32 %v2682_v60, %v3148_v63  ;;  %v3153_v31 = vpack.c.bf16 %v2818_v19, %v2816_v16  ;;  %v1419_v33 = vmul.f32 %v1411_v4, %v1395_v55 }
 0x20a   : > { %1740 = vmatpush1.bf16.msra.mxu1 %v3152_v61  ;;  %v1386_v32 = vmul.f32 %v2661_v59, %v3149_v37  ;;  %v1388_v46 = vmul.f32 %v2686_v25, %v3151_v39  ;;  %v1402_v14 = vmul.f32 1.7320508, %v1330_v9  ;;  %v1421_v13 = vmul.f32 %v1413_v24, %v1397_v2  ;;  %v3156_v37 = vld [vmem:[#allocation16_spill] sm:$0xff]  ;;  %v3160_v61 = vld [vmem:[#allocation21_spill] sm:$0xff] }
 0x20b   : > { %1741 = vmatprep.subr.bf16.mxu1 %v3153_v31  ;;  %v1404_v35 = vmul.f32 1.7320508, %v1332_v8  ;;  %v1327_v63 = vsub.f32 %v2639_v44, %v3154_v34  ;;  %v1329_v16 = vsub.f32 %v2653_v20, %v3155_v38  ;;  %v1363_v23 = vmul.f32 %v2719_v22, %v3156_v37  ;;  %v3159_v2 = vld [vmem:[#allocation20_spill] sm:$0xff] }
 0x20c   : > { %v1394_v19 = vmin.f32 %v1358_v29, %v1386_v32  ;;  %v1396_v4 = vmin.f32 %v1360_v42, %v1388_v46  ;;  %v1410_v36 = vadd.f32 1.0, %v1402_v14  ;;  %v3157_v9 = vpack.c.bf16 %v2837_v21, %v2832_v48  ;;  %v2932_v46 = vpop.permute.xlu0 %1568  ;;  %v2934_v14 = vpop.permute.xlu1 %1573 }
 0x20d   : > { %v1427_v39 = vpack.c.bf16 %v1421_v13, %v1419_v33  ;;  %v1412_v50 = vadd.f32 1.0, %v1404_v35  ;;  %v1335_v40 = vand.u32 2147483647, %v1327_v63  ;;  %v1337_v28 = vand.u32 2147483647, %v1329_v16 }
 0x20e   : > { %1742 = vmatpush1.bf16.msra.mxu1 %v3157_v9  ;;  %v1418_v55 = vmul.f32 %v1410_v36, %v1394_v19  ;;  %v1365_v49 = vmul.f32 %v2739_v11, %v3158_v17  ;;  %v1391_v29 = vmul.f32 %v2723_v26, %v3159_v2  ;;  %v1393_v24 = vmul.f32 %v2747_v7, %v3160_v61 }
 0x20f   : > { %1743 = vmatprep.subr.bf16.mxu1 %v1297_v45  ;;  %v1420_v8 = vmul.f32 %v1412_v50, %v1396_v4  ;;  %v1407_v42 = vmul.f32 1.7320508, %v1335_v40  ;;  %v1409_v31 = vmul.f32 1.7320508, %v1337_v28  ;;  %v1326_v48 = vsub.f32 %v2633_v27, %v3154_v34 }
 0x210   : > { %v1399_v21 = vmin.f32 %v1363_v23, %v1391_v29  ;;  %v1401_v33 = vmin.f32 %v1365_v49, %v1393_v24  ;;  %v1328_v45 = vsub.f32 %v2644_v56, %v3155_v38  ;;  %v1362_v32 = vmul.f32 %v2703_v62, %v3156_v37 }
 0x211   : > { %v1426_v13 = vpack.c.bf16 %v1420_v8, %v1418_v55  ;;  %v1415_v35 = vadd.f32 1.0, %v1407_v42  ;;  %v1417_v63 = vadd.f32 1.0, %v1409_v31  ;;  %v1334_v16 = vand.u32 2147483647, %v1326_v48  ;;  %v2952_v42 = vpop.permute.xlu0 %1578  ;;  %v2954_v31 = vpop.permute.xlu1 %1583 }
 0x212   : > { %1744 = vmatpush1.bf16.msra.mxu1 %v1296_v54  ;;  %v1336_v19 = vand.u32 2147483647, %v1328_v45  ;;  %v1364_v34 = vmul.f32 %v2727_v5, %v3158_v17  ;;  %v1390_v38 = vmul.f32 %v2710_v0, %v3159_v2  ;;  %v1392_v4 = vmul.f32 %v2733_v18, %v3160_v61 }
 0x213   : > { %1745 = vmatprep.subr.bf16.mxu1 %v1427_v39  ;;  %v1423_v36 = vmul.f32 %v1415_v35, %v1399_v21  ;;  %v1425_v37 = vmul.f32 %v1417_v63, %v1401_v33  ;;  %v1406_v23 = vmul.f32 1.7320508, %v1334_v16  ;;  %v1455_v54 = vsub.f32 %v2599_v52, %v2771_v47  ;;  %v3161_v39 = vld [vmem:[#allocation22_spill] sm:$0xff]  ;;  %v3162_v21 = vld [vmem:[#allocation25_spill] sm:$0xff] }
 0x214   : > { %v1398_v9 = vmin.f32 %v1362_v32, %v1390_v38  ;;  %v1400_v50 = vmin.f32 %v1364_v34, %v1392_v4  ;;  %v1408_v40 = vmul.f32 1.7320508, %v1336_v19  ;;  %v1457_v28 = vsub.f32 %v2617_v6, %v3161_v39 }
 0x215   : > { %v1429_v55 = vpack.c.bf16 %v1425_v37, %v1423_v36  ;;  %v1414_v17 = vadd.f32 1.0, %v1406_v23  ;;  %v1463_v49 = vand.u32 2147483647, %v1455_v54  ;;  %v1491_v2 = vmul.f32 %v2663_v53, %v2821_v30 }
 0x216   : > { %1746 = vmatpush1.bf16.msra.mxu1 %v1426_v13  ;;  %v1416_v29 = vadd.f32 1.0, %v1408_v40  ;;  %v1465_v61 = vand.u32 2147483647, %v1457_v28  ;;  %v1493_v24 = vmul.f32 %v2694_v3, %v2823_v12  ;;  %v1519_v8 = vmul.f32 %v2668_v1, %v2850_v15 }
 0x217   : > { %1747 = vmatprep.subr.bf16.mxu1 %v1429_v55  ;;  %v1422_v48 = vmul.f32 %v1414_v17, %v1398_v9  ;;  %v1521_v33 = vmul.f32 %v2697_v43, %v3162_v21  ;;  %v1535_v45 = vmul.f32 1.7320508, %v1463_v49  ;;  %v1454_v32 = vsub.f32 %v2595_v41, %v2771_v47  ;;  %v3163_v55 = vld [vmem:[#allocation23_spill] sm:$0xff]  ;;  %v3164_v17 = vld [vmem:[#allocation24_spill] sm:$0xff] }
 0x218   : > { %v1424_v13 = vmul.f32 %v1416_v29, %v1400_v50  ;;  %v1527_v35 = vmin.f32 %v1491_v2, %v1519_v8  ;;  %v1537_v63 = vmul.f32 1.7320508, %v1465_v61  ;;  %v1456_v16 = vsub.f32 %v2606_v58, %v3161_v39  ;;  %v2974_v2 = vpop.permute.xlu0 %1604 }
 0x219   : > { %v1529_v19 = vmin.f32 %v1493_v24, %v1521_v33  ;;  %v1543_v34 = vadd.f32 1.0, %v1535_v45  ;;  %v1462_v38 = vand.u32 2147483647, %v1454_v32  ;;  %v1490_v4 = vmul.f32 %v2658_v51, %v2821_v30  ;;  %v3165_v24 = vld [vmem:[#allocation15_spill] sm:$0xff] }
 0x21a   : > { %v1428_v36 = vpack.c.bf16 %v1424_v13, %v1422_v48  ;;  %v1545_v37 = vadd.f32 1.0, %v1537_v63  ;;  %v1464_v23 = vand.u32 2147483647, %v1456_v16  ;;  %v1492_v54 = vmul.f32 %v2682_v60, %v2823_v12  ;;  %v2976_v12 = vpop.permute.xlu1 %1609  ;;  %v3166_v13 = vld [vmem:[#allocation7_spill] sm:$0xff] }
 0x21b   : > { %v1551_v9 = vmul.f32 %v1543_v34, %v1527_v35  ;;  %v1518_v47 = vmul.f32 %v2661_v59, %v2850_v15  ;;  %v1520_v50 = vmul.f32 %v2686_v25, %v3162_v21  ;;  %v1534_v40 = vmul.f32 1.7320508, %v1462_v38 }
 0x21c   : > { %1748 = vmatpush1.bf16.msra.mxu1 %v1428_v36  ;;  %v1553_v39 = vmul.f32 %v1545_v37, %v1529_v19  ;;  %v1536_v28 = vmul.f32 1.7320508, %v1464_v23  ;;  %v1459_v30 = vsub.f32 %v2639_v44, %v3163_v55  ;;  %v1461_v49 = vsub.f32 %v2653_v20, %v3164_v17 }
 0x21d   : > { %v1526_v29 = vmin.f32 %v1490_v4, %v1518_v47  ;;  %v1528_v61 = vmin.f32 %v1492_v54, %v1520_v50  ;;  %v1542_v15 = vadd.f32 1.0, %v1534_v40  ;;  %v1495_v8 = vmul.f32 %v2719_v22, %v3165_v24 }
 0x21e   : > { %v1559_v48 = vpack.c.bf16 %v1553_v39, %v1551_v9  ;;  %v1544_v21 = vadd.f32 1.0, %v1536_v28  ;;  %v1467_v33 = vand.u32 2147483647, %v1459_v30  ;;  %v1469_v45 = vand.u32 2147483647, %v1461_v49  ;;  %v1633_v39 = vpop.permute.xlu0 %1632  ;;  %v1638_v28 = vpop.permute.xlu1 %1637 }
 0x21f   : > { %v1550_v32 = vmul.f32 %v1542_v15, %v1526_v29  ;;  %v1497_v35 = vmul.f32 %v2739_v11, %v3166_v13  ;;  %v1523_v63 = vmul.f32 %v2723_v26, %v2907_v10  ;;  %v1525_v16 = vmul.f32 %v2747_v7, %v2909_v57 }
 0x220   : > { %1749 = vmatprep.subr.bf16.mxu1 %v1559_v48  ;;  %v1552_v19 = vmul.f32 %v1544_v21, %v1528_v61  ;;  %v1539_v34 = vmul.f32 1.7320508, %v1467_v33  ;;  %v1541_v38 = vmul.f32 1.7320508, %v1469_v45  ;;  %v1458_v4 = vsub.f32 %v2633_v27, %v3163_v55 }
 0x221   : > { %v1531_v36 = vmin.f32 %v1495_v8, %v1523_v63  ;;  %v1533_v37 = vmin.f32 %v1497_v35, %v1525_v16  ;;  %v1460_v23 = vsub.f32 %v2644_v56, %v3164_v17  ;;  %v1494_v54 = vmul.f32 %v2703_v62, %v3165_v24 }
 0x222   : > { %v1558_v9 = vpack.c.bf16 %v1552_v19, %v1550_v32  ;;  %v1547_v47 = vadd.f32 1.0, %v1539_v34  ;;  %v1549_v50 = vadd.f32 1.0, %v1541_v38  ;;  %v1466_v40 = vand.u32 2147483647, %v1458_v4  ;;  %v1615_v38 = vpop.permute.xlu0 %1614  ;;  %v1620_v4 = vpop.permute.xlu1 %1619 }
 0x223   : > { %v1468_v30 = vand.u32 2147483647, %v1460_v23  ;;  %v1496_v49 = vmul.f32 %v2727_v5, %v3166_v13  ;;  %v1522_v55 = vmul.f32 %v2710_v0, %v2907_v10  ;;  %v1524_v29 = vmul.f32 %v2733_v18, %v2909_v57 }
 0x224   : > { %1750 = vmatpush1.bf16.msra.mxu1 %v1558_v9  ;;  %v1555_v17 = vmul.f32 %v1547_v47, %v1531_v36  ;;  %v1557_v61 = vmul.f32 %v1549_v50, %v1533_v37  ;;  %v1538_v15 = vmul.f32 1.7320508, %v1466_v40  ;;  %v1587_v24 = vsub.f32 %v2599_v52, %v2932_v46 }
 0x225   : > { %v1530_v8 = vmin.f32 %v1494_v54, %v1522_v55  ;;  %v1532_v48 = vmin.f32 %v1496_v49, %v1524_v29  ;;  %v1540_v21 = vmul.f32 1.7320508, %v1468_v30  ;;  %v1589_v33 = vsub.f32 %v2617_v6, %v2934_v14 }
 0x226   : > { %v1561_v45 = vpack.c.bf16 %v1557_v61, %v1555_v17  ;;  %v1546_v32 = vadd.f32 1.0, %v1538_v15  ;;  %v1595_v13 = vand.u32 2147483647, %v1587_v24  ;;  %v1623_v10 = vmul.f32 %v2663_v53, %v2974_v2  ;;  %v1648_v61 = vpop.permute.xlu1 %1647 }
 0x227   : > { %v1548_v57 = vadd.f32 1.0, %v1540_v21  ;;  %v1597_v35 = vand.u32 2147483647, %v1589_v33  ;;  %v1625_v63 = vmul.f32 %v2694_v3, %v2976_v12  ;;  %v1651_v16 = vmul.f32 %v2668_v1, %v1633_v39 }
 0x228   : > { %1751 = vmatprep.subr.bf16.mxu1 %v1561_v45  ;;  %v1554_v52 = vmul.f32 %v1546_v32, %v1530_v8  ;;  %v1653_v19 = vmul.f32 %v2697_v43, %v1638_v28  ;;  %v1667_v34 = vmul.f32 1.7320508, %v1595_v13  ;;  %v1586_v6 = vsub.f32 %v2595_v41, %v2932_v46 }
 0x229   : > { %v1556_v36 = vmul.f32 %v1548_v57, %v1532_v48  ;;  %v1659_v37 = vmin.f32 %v1623_v10, %v1651_v16  ;;  %v1669_v53 = vmul.f32 1.7320508, %v1597_v35  ;;  %v1588_v23 = vsub.f32 %v2606_v58, %v2934_v14 }
 0x22a   : > { %v1661_v54 = vmin.f32 %v1625_v63, %v1653_v19  ;;  %v1675_v3 = vadd.f32 1.0, %v1667_v34  ;;  %v1594_v9 = vand.u32 2147483647, %v1586_v6  ;;  %v1622_v1 = vmul.f32 %v2658_v51, %v2974_v2 }
 0x22b   : > { %v1560_v47 = vpack.c.bf16 %v1556_v36, %v1554_v52  ;;  %v1677_v43 = vadd.f32 1.0, %v1669_v53  ;;  %v1596_v50 = vand.u32 2147483647, %v1588_v23  ;;  %v1624_v41 = vmul.f32 %v2682_v60, %v2976_v12  ;;  %v1643_v12 = vpop.permute.xlu0 %1642 }
 0x22c   : > { %v1683_v46 = vmul.f32 %v1675_v3, %v1659_v37  ;;  %v1650_v40 = vmul.f32 %v2661_v59, %v1633_v39  ;;  %v1652_v30 = vmul.f32 %v2686_v25, %v1638_v28  ;;  %v1666_v49 = vmul.f32 1.7320508, %v1594_v9 }
 0x22d   : > { %1752 = vmatpush1.bf16.msra.mxu1 %v1560_v47  ;;  %v1685_v58 = vmul.f32 %v1677_v43, %v1661_v54  ;;  %v1668_v14 = vmul.f32 1.7320508, %v1596_v50  ;;  %v1591_v55 = vsub.f32 %v2639_v44, %v2952_v42  ;;  %v1593_v51 = vsub.f32 %v2653_v20, %v2954_v31 }
 0x22e   : > { %v1658_v2 = vmin.f32 %v1622_v1, %v1650_v40  ;;  %v1660_v29 = vmin.f32 %v1624_v41, %v1652_v30  ;;  %v1674_v17 = vadd.f32 1.0, %v1666_v49  ;;  %v1627_v60 = vmul.f32 %v2719_v22, %v1615_v38 }
 0x22f   : > { %v1691_v59 = vpack.c.bf16 %v1685_v58, %v1683_v46  ;;  %v1676_v39 = vadd.f32 1.0, %v1668_v14  ;;  %v1599_v25 = vand.u32 2147483647, %v1591_v55  ;;  %v1601_v28 = vand.u32 2147483647, %v1593_v51 }
 0x230   : > { %v1682_v15 = vmul.f32 %v1674_v17, %v1658_v2  ;;  %v1629_v24 = vmul.f32 %v2739_v11, %v1620_v4  ;;  %v1655_v8 = vmul.f32 %v2723_v26, %v1643_v12  ;;  %v1657_v44 = vmul.f32 %v2747_v7, %v1648_v61 }
 0x231   : > { %1753 = vmatprep.subr.bf16.mxu1 %v1691_v59  ;;  %v1684_v20 = vmul.f32 %v1676_v39, %v1660_v29  ;;  %v1671_v48 = vmul.f32 1.7320508, %v1599_v25  ;;  %v1673_v21 = vmul.f32 1.7320508, %v1601_v28  ;;  %v1590_v22 = vsub.f32 %v2633_v27, %v2952_v42 }
 0x232   : > { %v1663_v33 = vmin.f32 %v1627_v60, %v1655_v8  ;;  %v1665_v45 = vmin.f32 %v1629_v24, %v1657_v44  ;;  %v1592_v32 = vsub.f32 %v2644_v56, %v2954_v31  ;;  %v1626_v13 = vmul.f32 %v2703_v62, %v1615_v38 }
 0x233   : > { %v1690_v10 = vpack.c.bf16 %v1684_v20, %v1682_v15  ;;  %v1679_v11 = vadd.f32 1.0, %v1671_v48  ;;  %v1681_v57 = vadd.f32 1.0, %v1673_v21  ;;  %v1598_v26 = vand.u32 2147483647, %v1590_v22 }
 0x234   : > { %v1600_v35 = vand.u32 2147483647, %v1592_v32  ;;  %v1628_v7 = vmul.f32 %v2727_v5, %v1620_v4  ;;  %v1654_v63 = vmul.f32 %v2710_v0, %v1643_v12  ;;  %v1656_v16 = vmul.f32 %v2733_v18, %v1648_v61  ;;  %v2141_v0 = vld [vmem:[%s3091_s4] sm:$0xff] }
 0x235   : > { %1754 = vmatpush1.bf16.msra.mxu1 %v1690_v10  ;;  %v1687_v27 = vmul.f32 %v1679_v11, %v1663_v33  ;;  %v1689_v42 = vmul.f32 %v1681_v57, %v1665_v45  ;;  %v1670_v52 = vmul.f32 1.7320508, %v1598_v26  ;;  %v1869_v18 = vcombine.low %v2141_v0, %v2141_v0 }
 0x236   : > { %v1662_v19 = vmin.f32 %v1626_v13, %v1654_v63  ;;  %v1664_v56 = vmin.f32 %v1628_v7, %v1656_v16  ;;  %v1672_v62 = vmul.f32 1.7320508, %v1600_v35 }
 0x237   : > { %v1693_v31 = vpack.c.bf16 %v1689_v42, %v1687_v27  ;;  %v1678_v34 = vadd.f32 1.0, %v1670_v52 }
 0x238   : > { %v1680_v6 = vadd.f32 1.0, %v1672_v62 }
 0x239   : > { %1755 = vmatprep.subr.bf16.mxu1 %v1693_v31  ;;  %v1686_v38 = vmul.f32 %v1678_v34, %v1662_v19 }
 0x23a   : > { %v1688_v36 = vmul.f32 %v1680_v6, %v1664_v56 }
 0x23c   : > { %v1692_v5 = vpack.c.bf16 %v1688_v36, %v1686_v38 }
 0x23e   : > { %1756 = vmatpush1.bf16.msra.mxu1 %v1692_v5 }
 0x241   : > { %1766 = vmatmul.mubr.bf16.vlgmr.msra.gmra.mrb[0].mxu1 %v1869_v18 }
 0x314   : > { %v1767_v4 = vpop.f32.mrb[0].mxu1 }
 0x315   : > { %1774 = vst [vmem:[%s248_s7] sm:$0xff] %v1767_v4  ;;  %v1769_v37 = vpop.f32.mrb[1].mxu1 }
 0x316   : > { %1775 = vst [vmem:[%s248_s7 + $0x8] sm:$0xff] %v1769_v37  ;;  %v1771_v53 = vpop.f32.mrb[2].mxu1 }
 0x317   : > { %v1772_v23 = vpop.f32.mrb[3].mxu1 }
 0x318   : > { %2155 = shalt.err (!%p2152_p5)
}
 0x319   : > { %s2156_s16 = scalar_lea.hbm %s3045_s12, 256  ;;  %s2160_s26 = scalar_lea.hbm %s3092_s5, 512 }
 0x31a   : > { %p2157_p7 = scmp.ne.s32.totalorder %s3045_s12, %s2156_s16  ;;  %p2161_p12 = scmp.lt.u32.totalorder %s3045_s12, %s3092_s5 }
 0x31b   : > { %p2162_p13 = scmp.lt.u32.totalorder %s2160_s26, %s2156_s16  ;;  %p2164_p1 = scmp.lt.u32.totalorder %s2156_s16, %s3045_s12 }
 0x31c   : > { %p2158_p10 = pnand %p2157_p7, %p2276_p6 }
 0x31d   : > { %p2163_p0 = por %p2162_p13, %p2161_p12 }
 0x31e   : > { %p2159_p11 = pneg %p2158_p10 }
 0x31f   : > { %p2165_p2 = por %p2164_p1, %p2163_p0 }
 0x321   : > { %p2166_p3 = pnand %p2165_p2, %p2159_p11 }
 0x323   : > { %2169 = shalt.err (!%p2166_p3)
}
 0x324   : > { %1879 = dma.vmem_to_hbm [thread:$0]  (%p2276_p6), %s3040_s8, 256, %s3045_s12, %s1777_s13  }
 0x325 PF: > { %s1803_s7 = sand.u32 1, %s2192_s18   ;;  %p1882_p4 = pnand %p1858_p9, %p2280_p8 }
 0x326   : > { %s1804_s9 = scalar_lea.sflag [#allocation5], %s1803_s7 }
 0x327   : > { %2187 = dma.done.wait (!%p1882_p4), %s1804_s9, 256  }
 0x328   : > { %2189 = vsyncadd (!%p1882_p4), %s1804_s9, 4294967040  ;;  %p15_p5 = scmp.ge.s32.totalorder %s2261_s24, 4   ;;  %s3167_s18 = smov %s2196_s19 }
 0x329   : > { %s3168_s19 = smov %s2200_s20  ;;  %s3169_s20 = smov %s2274_s27 }
 0x32a   : > { %s3170_s21 = smov %s2261_s24  ;;  %17 = sbr.rel (!%p15_p5) target bundleno = 3 (0x3), region = 103 }
 0x331   :  { %1809 = vsyncpa [#allocation5], 1 }
 0x332   :  { %1811 = vsyncpa [#allocation5 + $0x1], 1 }

</bundles_post_ra>
